<compile_context>
chip_gen: v6e
topology: v6e:2x2x1
jax: 0.10.0
libtpu: 0.0.40
codegen_flags: <defaults>
</compile_context>

<pallas_src>
import functools

import jax
import jax.numpy as jnp
from jax.experimental import pallas as pl
from jax.experimental.pallas import tpu as pltpu


# ----------------------------------------------------------------------------
# Pallas kernel: fused conv + BN(scale,bias) + ReLU for one (batch, row-block)
# ----------------------------------------------------------------------------
def conv_bn_relu_kernel(x_ref, w_ref, sc_ref, bi_ref, o_ref, patch_ref,
                        *, Dh, Dw, R, Wo):
    """One grid step = R output rows of one batch element.

    x_ref    : (1, Hps, Wps, Cpack) space-to-depth packed, padded input
                                    (stride folded into the channel axis).
    w_ref    : (Dh*Dw*Cpack, Cout_p) im2col-ordered weights, Cout padded to 128.
    sc_ref   : (1, Cout_p)          folded BN scale.
    bi_ref   : (1, Cout_p)          folded BN bias (includes conv bias).
    o_ref    : (1, R, Wo, Cout_p)   R output rows, lane-dense last dim.
    patch_ref: (R*Wo, Dh*Dw*Cpack)  VMEM scratch for the im2col patch.
    """
    hb = pl.program_id(1)
    row0 = hb * R                       # first output row of this block
    Cpack = x_ref.shape[-1]
    n_taps = Dh * Dw

    if n_taps == 1:                     # 1x1 conv: the slab *is* the patch
        patch = x_ref[0, pl.ds(row0, R), pl.ds(0, Wo), :].reshape(R * Wo, Cpack)
    else:
        # Build the (R*Wo, K) im2col patch with a handful of contiguous reads
        # (all strides were folded away wrapper-side), then do ONE matmul.
        for di in range(Dh):
            for dj in range(Dw):
                slab = x_ref[0, pl.ds(row0 + di, R), pl.ds(dj, Wo), :]  # (R,Wo,Cpack)
                col = (di * Dw + dj) * Cpack
                patch_ref[:, col:col + Cpack] = slab.reshape(R * Wo, Cpack)
        patch = patch_ref[...]

    acc = jnp.dot(patch, w_ref[...], preferred_element_type=jnp.float32)
    y = jnp.maximum(acc * sc_ref[...] + bi_ref[...], 0.0)    # folded BN + ReLU
    o_ref[0] = y.reshape(R, Wo, y.shape[-1]).astype(o_ref.dtype)


# ----------------------------------------------------------------------------
# Wrapper: layout plumbing (padding, stride packing, weight im2col, BlockSpecs)
# ----------------------------------------------------------------------------
def conv_bn_relu_nhwc(x, w, scale, bias, *, stride=1, padding=0,
                      block_rows=None, compute_dtype=jnp.float32):
    """x: (N, H, W, Cin) NHWC; w: (KH, KW, Cin, Cout). Returns NHWC float32."""
    N, H, W, Cin = x.shape
    KH, KW, _, Cout = w.shape
    s, p = int(stride), int(padding)

    Hp, Wp = H + 2 * p, W + 2 * p
    Ho = (Hp - KH) // s + 1
    Wo = (Wp - KW) // s + 1
    assert Ho > 0 and Wo > 0

    # ---- fold the stride into the channel axis (space-to-depth), in XLA ----
    Hps, Wps = -(-Hp // s), -(-Wp // s)
    xp = jnp.pad(x, ((0, 0),
                     (p, p + Hps * s - Hp),
                     (p, p + Wps * s - Wp),
                     (0, 0)))
    Cpack = s * s * Cin
    xr = xp.reshape(N, Hps, s, Wps, s, Cin).transpose(0, 1, 3, 2, 4, 5)
    xr = xr.reshape(N, Hps, Wps, Cpack).astype(compute_dtype)

    # ---- im2col weight matrix; pad Cout to a lane-dense multiple of 128 ----
    Dh, Dw = (KH - 1) // s + 1, (KW - 1) // s + 1
    LANES = 128
    Cout_p = -(-Cout // LANES) * LANES
    w_pad = jnp.zeros((Dh * s, Dw * s, Cin, Cout), w.dtype).at[:KH, :KW].set(w)
    w_big = w_pad.reshape(Dh, s, Dw, s, Cin, Cout).transpose(0, 2, 1, 3, 4, 5)
    w_big = w_big.reshape(Dh * Dw * Cpack, Cout)
    w_big = jnp.pad(w_big, ((0, 0), (0, Cout_p - Cout))).astype(compute_dtype)
    K = Dh * Dw * Cpack

    sc = jnp.pad(scale.reshape(1, Cout).astype(jnp.float32),
                 ((0, 0), (0, Cout_p - Cout)))
    bi = jnp.pad(bias.reshape(1, Cout).astype(jnp.float32),
                 ((0, 0), (0, Cout_p - Cout)))

    # ---- rows per grid step: amortize per-step pipeline overhead -----------
    if block_rows is None:
        block_rows = Ho
        while block_rows > 1 and (Ho % block_rows != 0 or block_rows * Wo > 512):
            block_rows -= 1
    R = int(block_rows)
    assert Ho % R == 0
    n_hblk = Ho // R

    kernel = functools.partial(conv_bn_relu_kernel, Dh=Dh, Dw=Dw, R=R, Wo=Wo)

    flops = 2 * N * Ho * Wo * KH * KW * Cin * Cout
    bytes_accessed = int(xr.size * xr.dtype.itemsize
                         + w_big.size * w_big.dtype.itemsize
                         + N * Ho * Wo * Cout_p * 4)

    # NOTE(v7x): the input block below is the full (packed, padded) image per
    # batch element; at real model sizes check the double-buffered footprint
    # against the 32 MiB scoped / 64 MiB physical VMEM and window the H axis
    # (smaller block_rows + H-windowed in_spec) if it does not fit.
    out = pl.pallas_call(
        kernel,
        out_shape=jax.ShapeDtypeStruct((N, Ho, Wo, Cout_p), jnp.float32),
        grid_spec=pltpu.PrefetchScalarGridSpec(
            num_scalar_prefetch=0,
            grid=(N, n_hblk),
            in_specs=[
                pl.BlockSpec((1, Hps, Wps, Cpack), lambda n, hb: (n, 0, 0, 0)),
                pl.BlockSpec((K, Cout_p), lambda n, hb: (0, 0)),
                pl.BlockSpec((1, Cout_p), lambda n, hb: (0, 0)),
                pl.BlockSpec((1, Cout_p), lambda n, hb: (0, 0)),
            ],
            out_specs=pl.BlockSpec((1, R, Wo, Cout_p), lambda n, hb: (n, hb, 0, 0)),
            scratch_shapes=[pltpu.VMEM((R * Wo, K), compute_dtype)],
        ),
        compiler_params=pltpu.CompilerParams(
            dimension_semantics=("parallel", "parallel"),
            vmem_limit_bytes=32 * 1024 * 1024),
        cost_estimate=pl.CostEstimate(flops=flops, transcendentals=0,
                                      bytes_accessed=bytes_accessed),
    )(xr, w_big, sc, bi)

    return out[..., :Cout]              # drop the lane padding


def conv_block_forward(x_nchw, w, scale, bias, *, stride=1, padding=0,
                       compute_dtype=jnp.float32):
    """ConvBlock.forward: relu(bn(conv(x))). NCHW in / NCHW out (PyTorch layout)."""
    x = jnp.transpose(x_nchw, (0, 2, 3, 1))                  # NCHW -> NHWC
    y = conv_bn_relu_nhwc(x, w, scale, bias, stride=stride, padding=padding,
                          compute_dtype=compute_dtype)
    return jnp.transpose(y, (0, 3, 1, 2))                    # NHWC -> NCHW


# ----------------------------------------------------------------------------
# Parameters (conv + eval-mode BN folded into scale/bias) and a JAX reference
# ----------------------------------------------------------------------------
def make_convblock_params(key, cin, cout, k):
    kw_, kb, kg, kbeta, km, kv = jax.random.split(key, 6)
    w = jax.random.normal(kw_, (k, k, cin, cout), jnp.float32) * 0.1
    conv_b = jax.random.normal(kb, (cout,), jnp.float32) * 0.1
    gamma = jax.random.uniform(kg, (cout,), jnp.float32, 0.5, 1.5)
    beta = jax.random.normal(kbeta, (cout,), jnp.float32) * 0.1
    run_mean = jax.random.normal(km, (cout,), jnp.float32) * 0.1
    run_var = jax.random.uniform(kv, (cout,), jnp.float32, 0.5, 1.5)
    eps = 1e-5
    scale = gamma / jnp.sqrt(run_var + eps)                  # fold BN (eval mode)
    bias = (conv_b - run_mean) * scale + beta
    return w, scale, bias


def reference_conv_block(x_nchw, w, scale, bias, *, stride, padding):
    out = jax.lax.conv_general_dilated(
        x_nchw, w, window_strides=(stride, stride),
        padding=[(padding, padding), (padding, padding)],
        dimension_numbers=("NCHW", "HWIO", "NCHW"),
        precision=jax.lax.Precision.HIGHEST)
    out = out * scale[None, :, None, None] + bias[None, :, None, None]
    return jnp.maximum(out, 0.0)


if __name__ == "__main__":
    key = jax.random.PRNGKey(0)
    N, Cin, H, W = 2, 4, 16, 16
    Cout = 16

    k_x, k_p = jax.random.split(key, 2)
    x = jax.random.normal(k_x, (N, Cin, H, W), jnp.float32)

    # Representative ConvBlock configurations (kernel size / stride / padding).
    configs = [(3, 1, 1), (3, 2, 1), (1, 1, 0)]
    pkeys = jax.random.split(k_p, len(configs))

    for (k, s, p), pk in zip(configs, pkeys):
        w, scale, bias = make_convblock_params(pk, Cin, Cout, k)
        y = conv_block_forward(x, w, scale, bias, stride=s, padding=p)
        jax.block_until_ready(y)

        Ho = (H + 2 * p - k) // s + 1
        Wo = (W + 2 * p - k) // s + 1
        assert y.shape == (N, Cout, Ho, Wo), (k, s, p, y.shape)
        assert y.dtype == jnp.float32

        ref = reference_conv_block(x, w, scale, bias, stride=s, padding=p)
        err = float(jnp.max(jnp.abs(y - ref)))
        assert err < 5e-2, (k, s, p, err)

    print("KERNEL_OK")
</pallas_src>

<mosaic_0001>
module attributes {stable_mosaic.version = 11 : i64} {
  func.func @conv_bn_relu_kernel(%arg0: i32, %arg1: i32, %arg2: memref<1x18x18x4xf32, #tpu.memory_space<vmem>>, %arg3: memref<36x128xf32, #tpu.memory_space<vmem>>, %arg4: memref<1x128xf32, #tpu.memory_space<vmem>>, %arg5: memref<1x128xf32, #tpu.memory_space<vmem>>, %arg6: memref<1x16x16x128xf32, #tpu.memory_space<vmem>>, %arg7: memref<256x36xf32, #tpu.memory_space<vmem>>) attributes {dimension_semantics = [#tpu.dimension_semantics<parallel>, #tpu.dimension_semantics<parallel>], iteration_bounds = array<i64: 2, 1>, scalar_prefetch = 0 : i64, scratch_operands = 1 : i64, tpu.core_type = #tpu.core_type<tc>, window_params = [{transform_indices = @transform_0, window_bounds = array<i64: 1, 18, 18, 4>}, {pipeline_mode = #tpu.pipeline_mode<synchronous>, transform_indices = @transform_1, window_bounds = array<i64: 36, 128>}, {pipeline_mode = #tpu.pipeline_mode<synchronous>, transform_indices = @transform_2, window_bounds = array<i64: 1, 128>}, {pipeline_mode = #tpu.pipeline_mode<synchronous>, transform_indices = @transform_3, window_bounds = array<i64: 1, 128>}, {transform_indices = @transform_4, window_bounds = array<i64: 1, 16, 16, 128>}]} {
    %c16_i32 = arith.constant 16 : i32
    %0 = arith.muli %arg1, %c16_i32 : i32
    %c0_i32 = arith.constant 0 : i32
    %1 = arith.addi %0, %c0_i32 : i32
    %c0 = arith.constant 0 : index
    %2 = arith.index_cast %1 : i32 to index
    %c0_0 = arith.constant 0 : index
    %c0_1 = arith.constant 0 : index
    %3 = vector.load %arg2[%c0, %2, %c0_0, %c0_1] : memref<1x18x18x4xf32, #tpu.memory_space<vmem>>, vector<1x16x16x4xf32>
    %4 = vector.shape_cast %3 : vector<1x16x16x4xf32> to vector<16x16x4xf32>
    %5 = vector.shape_cast %4 : vector<16x16x4xf32> to vector<256x4xf32>
    %c0_2 = arith.constant 0 : index
    %c0_3 = arith.constant 0 : index
    %6 = vector.load %arg7[%c0_2, %c0_3] : memref<256x36xf32, #tpu.memory_space<vmem>>, vector<256x4xf32>
    tpu.vector_store %arg7[%c0_2, %c0_3], %5 {strides = array<i32>} : memref<256x36xf32, #tpu.memory_space<vmem>>, vector<256x4xf32>,
    %c0_i32_4 = arith.constant 0 : i32
    %7 = arith.addi %0, %c0_i32_4 : i32
    %c0_5 = arith.constant 0 : index
    %8 = arith.index_cast %7 : i32 to index
    %c1 = arith.constant 1 : index
    %c0_6 = arith.constant 0 : index
    %9 = vector.load %arg2[%c0_5, %8, %c1, %c0_6] : memref<1x18x18x4xf32, #tpu.memory_space<vmem>>, vector<1x16x16x4xf32>
    %10 = vector.shape_cast %9 : vector<1x16x16x4xf32> to vector<16x16x4xf32>
    %11 = vector.shape_cast %10 : vector<16x16x4xf32> to vector<256x4xf32>
    %c0_7 = arith.constant 0 : index
    %c4 = arith.constant 4 : index
    %12 = vector.load %arg7[%c0_7, %c4] : memref<256x36xf32, #tpu.memory_space<vmem>>, vector<256x4xf32>
    tpu.vector_store %arg7[%c0_7, %c4], %11 {strides = array<i32>} : memref<256x36xf32, #tpu.memory_space<vmem>>, vector<256x4xf32>,
    %c0_i32_8 = arith.constant 0 : i32
    %13 = arith.addi %0, %c0_i32_8 : i32
    %c0_9 = arith.constant 0 : index
    %14 = arith.index_cast %13 : i32 to index
    %c2 = arith.constant 2 : index
    %c0_10 = arith.constant 0 : index
    %15 = vector.load %arg2[%c0_9, %14, %c2, %c0_10] : memref<1x18x18x4xf32, #tpu.memory_space<vmem>>, vector<1x16x16x4xf32>
    %16 = vector.shape_cast %15 : vector<1x16x16x4xf32> to vector<16x16x4xf32>
    %17 = vector.shape_cast %16 : vector<16x16x4xf32> to vector<256x4xf32>
    %c0_11 = arith.constant 0 : index
    %c8 = arith.constant 8 : index
    %18 = vector.load %arg7[%c0_11, %c8] : memref<256x36xf32, #tpu.memory_space<vmem>>, vector<256x4xf32>
    tpu.vector_store %arg7[%c0_11, %c8], %17 {strides = array<i32>} : memref<256x36xf32, #tpu.memory_space<vmem>>, vector<256x4xf32>,
    %c1_i32 = arith.constant 1 : i32
    %19 = arith.addi %0, %c1_i32 : i32
    %c0_12 = arith.constant 0 : index
    %20 = arith.index_cast %19 : i32 to index
    %c0_13 = arith.constant 0 : index
    %c0_14 = arith.constant 0 : index
    %21 = vector.load %arg2[%c0_12, %20, %c0_13, %c0_14] : memref<1x18x18x4xf32, #tpu.memory_space<vmem>>, vector<1x16x16x4xf32>
    %22 = vector.shape_cast %21 : vector<1x16x16x4xf32> to vector<16x16x4xf32>
    %23 = vector.shape_cast %22 : vector<16x16x4xf32> to vector<256x4xf32>
    %c0_15 = arith.constant 0 : index
    %c12 = arith.constant 12 : index
    %24 = vector.load %arg7[%c0_15, %c12] : memref<256x36xf32, #tpu.memory_space<vmem>>, vector<256x4xf32>
    tpu.vector_store %arg7[%c0_15, %c12], %23 {strides = array<i32>} : memref<256x36xf32, #tpu.memory_space<vmem>>, vector<256x4xf32>,
    %c1_i32_16 = arith.constant 1 : i32
    %25 = arith.addi %0, %c1_i32_16 : i32
    %c0_17 = arith.constant 0 : index
    %26 = arith.index_cast %25 : i32 to index
    %c1_18 = arith.constant 1 : index
    %c0_19 = arith.constant 0 : index
    %27 = vector.load %arg2[%c0_17, %26, %c1_18, %c0_19] : memref<1x18x18x4xf32, #tpu.memory_space<vmem>>, vector<1x16x16x4xf32>
    %28 = vector.shape_cast %27 : vector<1x16x16x4xf32> to vector<16x16x4xf32>
    %29 = vector.shape_cast %28 : vector<16x16x4xf32> to vector<256x4xf32>
    %c0_20 = arith.constant 0 : index
    %c16 = arith.constant 16 : index
    %30 = vector.load %arg7[%c0_20, %c16] : memref<256x36xf32, #tpu.memory_space<vmem>>, vector<256x4xf32>
    tpu.vector_store %arg7[%c0_20, %c16], %29 {strides = array<i32>} : memref<256x36xf32, #tpu.memory_space<vmem>>, vector<256x4xf32>,
    %c1_i32_21 = arith.constant 1 : i32
    %31 = arith.addi %0, %c1_i32_21 : i32
    %c0_22 = arith.constant 0 : index
    %32 = arith.index_cast %31 : i32 to index
    %c2_23 = arith.constant 2 : index
    %c0_24 = arith.constant 0 : index
    %33 = vector.load %arg2[%c0_22, %32, %c2_23, %c0_24] : memref<1x18x18x4xf32, #tpu.memory_space<vmem>>, vector<1x16x16x4xf32>
    %34 = vector.shape_cast %33 : vector<1x16x16x4xf32> to vector<16x16x4xf32>
    %35 = vector.shape_cast %34 : vector<16x16x4xf32> to vector<256x4xf32>
    %c0_25 = arith.constant 0 : index
    %c20 = arith.constant 20 : index
    %36 = vector.load %arg7[%c0_25, %c20] : memref<256x36xf32, #tpu.memory_space<vmem>>, vector<256x4xf32>
    tpu.vector_store %arg7[%c0_25, %c20], %35 {strides = array<i32>} : memref<256x36xf32, #tpu.memory_space<vmem>>, vector<256x4xf32>,
    %c2_i32 = arith.constant 2 : i32
    %37 = arith.addi %0, %c2_i32 : i32
    %c0_26 = arith.constant 0 : index
    %38 = arith.index_cast %37 : i32 to index
    %c0_27 = arith.constant 0 : index
    %c0_28 = arith.constant 0 : index
    %39 = vector.load %arg2[%c0_26, %38, %c0_27, %c0_28] : memref<1x18x18x4xf32, #tpu.memory_space<vmem>>, vector<1x16x16x4xf32>
    %40 = vector.shape_cast %39 : vector<1x16x16x4xf32> to vector<16x16x4xf32>
    %41 = vector.shape_cast %40 : vector<16x16x4xf32> to vector<256x4xf32>
    %c0_29 = arith.constant 0 : index
    %c24 = arith.constant 24 : index
    %42 = vector.load %arg7[%c0_29, %c24] : memref<256x36xf32, #tpu.memory_space<vmem>>, vector<256x4xf32>
    tpu.vector_store %arg7[%c0_29, %c24], %41 {strides = array<i32>} : memref<256x36xf32, #tpu.memory_space<vmem>>, vector<256x4xf32>,
    %c2_i32_30 = arith.constant 2 : i32
    %43 = arith.addi %0, %c2_i32_30 : i32
    %c0_31 = arith.constant 0 : index
    %44 = arith.index_cast %43 : i32 to index
    %c1_32 = arith.constant 1 : index
    %c0_33 = arith.constant 0 : index
    %45 = vector.load %arg2[%c0_31, %44, %c1_32, %c0_33] : memref<1x18x18x4xf32, #tpu.memory_space<vmem>>, vector<1x16x16x4xf32>
    %46 = vector.shape_cast %45 : vector<1x16x16x4xf32> to vector<16x16x4xf32>
    %47 = vector.shape_cast %46 : vector<16x16x4xf32> to vector<256x4xf32>
    %c0_34 = arith.constant 0 : index
    %c28 = arith.constant 28 : index
    %48 = vector.load %arg7[%c0_34, %c28] : memref<256x36xf32, #tpu.memory_space<vmem>>, vector<256x4xf32>
    tpu.vector_store %arg7[%c0_34, %c28], %47 {strides = array<i32>} : memref<256x36xf32, #tpu.memory_space<vmem>>, vector<256x4xf32>,
    %c2_i32_35 = arith.constant 2 : i32
    %49 = arith.addi %0, %c2_i32_35 : i32
    %c0_36 = arith.constant 0 : index
    %50 = arith.index_cast %49 : i32 to index
    %c2_37 = arith.constant 2 : index
    %c0_38 = arith.constant 0 : index
    %51 = vector.load %arg2[%c0_36, %50, %c2_37, %c0_38] : memref<1x18x18x4xf32, #tpu.memory_space<vmem>>, vector<1x16x16x4xf32>
    %52 = vector.shape_cast %51 : vector<1x16x16x4xf32> to vector<16x16x4xf32>
    %53 = vector.shape_cast %52 : vector<16x16x4xf32> to vector<256x4xf32>
    %c0_39 = arith.constant 0 : index
    %c32 = arith.constant 32 : index
    %54 = vector.load %arg7[%c0_39, %c32] : memref<256x36xf32, #tpu.memory_space<vmem>>, vector<256x4xf32>
    tpu.vector_store %arg7[%c0_39, %c32], %53 {strides = array<i32>} : memref<256x36xf32, #tpu.memory_space<vmem>>, vector<256x4xf32>,
    %c0_40 = arith.constant 0 : index
    %c0_41 = arith.constant 0 : index
    %55 = vector.load %arg7[%c0_40, %c0_41] : memref<256x36xf32, #tpu.memory_space<vmem>>, vector<256x36xf32>
    %c0_42 = arith.constant 0 : index
    %c0_43 = arith.constant 0 : index
    %56 = vector.load %arg3[%c0_42, %c0_43] : memref<36x128xf32, #tpu.memory_space<vmem>>, vector<36x128xf32>
    %cst = arith.constant dense<0.000000e+00> : vector<256x128xf32>
    %57 = tpu.matmul %55, %56, %cst {dimension_numbers = #tpu.dot_dimension_numbers<[1], [0], [0], [1], [0, 0, 1, 1], [], []>} : vector<256x36xf32>, vector<36x128xf32>, vector<256x128xf32> -> vector<256x128xf32>
    %c0_44 = arith.constant 0 : index
    %c0_45 = arith.constant 0 : index
    %58 = vector.load %arg4[%c0_44, %c0_45] : memref<1x128xf32, #tpu.memory_space<vmem>>, vector<1x128xf32>
    %59 = vector.broadcast %58 : vector<1x128xf32> to vector<256x128xf32>
    %60 = arith.mulf %57, %59 : vector<256x128xf32>
    %c0_46 = arith.constant 0 : index
    %c0_47 = arith.constant 0 : index
    %61 = vector.load %arg5[%c0_46, %c0_47] : memref<1x128xf32, #tpu.memory_space<vmem>>, vector<1x128xf32>
    %62 = vector.broadcast %61 : vector<1x128xf32> to vector<256x128xf32>
    %63 = arith.addf %60, %62 : vector<256x128xf32>
    %cst_48 = arith.constant 0.000000e+00 : f32
    %64 = vector.broadcast %cst_48 : f32 to vector<256x128xf32>
    %65 = arith.maximumf %63, %64 : vector<256x128xf32>
    %66 = vector.shape_cast %65 : vector<256x128xf32> to vector<16x16x128xf32>
    %c0_49 = arith.constant 0 : index
    %c0_50 = arith.constant 0 : index
    %c0_51 = arith.constant 0 : index
    %c0_52 = arith.constant 0 : index
    %67 = vector.load %arg6[%c0_49, %c0_50, %c0_51, %c0_52] : memref<1x16x16x128xf32, #tpu.memory_space<vmem>>, vector<1x16x16x128xf32>
    %68 = vector.shape_cast %67 : vector<1x16x16x128xf32> to vector<16x16x128xf32>
    %69 = vector.shape_cast %66 : vector<16x16x128xf32> to vector<1x16x16x128xf32>
    tpu.vector_store %arg6[%c0_49, %c0_50, %c0_51, %c0_52], %69 {strides = array<i32>} : memref<1x16x16x128xf32, #tpu.memory_space<vmem>>, vector<1x16x16x128xf32>,
    return
  }
  func.func @transform_0(%arg0: i32, %arg1: i32) -> (i32, i32, i32, i32) {
    %c0_i32 = arith.constant 0 : i32
    %c0_i32_0 = arith.constant 0 : i32
    %c0_i32_1 = arith.constant 0 : i32
    %c0_i32_2 = arith.constant 0 : i32
    return %arg0, %c0_i32, %c0_i32_0, %c0_i32_1 : i32, i32, i32, i32
  }
  func.func @transform_1(%arg0: i32, %arg1: i32) -> (i32, i32) {
    %c0_i32 = arith.constant 0 : i32
    %c0_i32_0 = arith.constant 0 : i32
    %c0_i32_1 = arith.constant 0 : i32
    return %c0_i32, %c0_i32_0 : i32, i32
  }
  func.func @transform_2(%arg0: i32, %arg1: i32) -> (i32, i32) {
    %c0_i32 = arith.constant 0 : i32
    %c0_i32_0 = arith.constant 0 : i32
    %c0_i32_1 = arith.constant 0 : i32
    return %c0_i32, %c0_i32_0 : i32, i32
  }
  func.func @transform_3(%arg0: i32, %arg1: i32) -> (i32, i32) {
    %c0_i32 = arith.constant 0 : i32
    %c0_i32_0 = arith.constant 0 : i32
    %c0_i32_1 = arith.constant 0 : i32
    return %c0_i32, %c0_i32_0 : i32, i32
  }
  func.func @transform_4(%arg0: i32, %arg1: i32) -> (i32, i32, i32, i32) {
    %c0_i32 = arith.constant 0 : i32
    %c0_i32_0 = arith.constant 0 : i32
    %c0_i32_1 = arith.constant 0 : i32
    return %arg0, %arg1, %c0_i32, %c0_i32_0 : i32, i32, i32, i32
  }
}

</mosaic_0001>

<bundles_post_ra>
// kernel: tpu_custom_call.1
= control target key start
LH: loop header
LB: loop body
LE: loop exit
PB: predicated region body
PF: predicated region fallthrough
CT: control target
= control target key end

     0   :  { %9 = vsyncpa [#allocation4], 0  ;;  %s4216_s0 = inlined_call_operand.vmem [shape: f32[2,18,18,4], index: 0, kind: input, shape index: {}]   ;;  %s4217_s1 = inlined_call_operand.vmem [shape: f32[36,128], index: 1, kind: input, shape index: {}]   ;;  %s4218_s2 = inlined_call_operand.vmem [shape: f32[1,128], index: 2, kind: input, shape index: {}]   ;;  %s4219_s3 = inlined_call_operand.vmem [shape: f32[1,128], index: 3, kind: input, shape index: {}]   ;;  %s4220_s4 = inlined_call_operand.hbm [shape: f32[2,16,16,128], index: 4, kind: output, shape index: {}]  }
   0x1   :  { %11 = vsyncpa [#allocation4 + $0x1], 0  ;;  %s2957_s15 = smov 0   ;;  %s2959_s16 = smov 0  }
   0x2   :  { %s2961_s17 = smov 0   ;;  %s2963_s18 = smov 0  }
   0x3   :  { %s2965_s19 = smov 0   ;;  %s2967_s20 = smov 0  }
   0x4 LB: > { %s2434_s21 = sadd.s32 4294967295, %s2920_s20   ;;  %s2435_s22 = sadd.s32 4294967294, %s2920_s20   ;;  %s2920_s20 = sphi %s2967_s20, %s17_s20   ;;  %s2916_s19 = sphi %s2965_s19, %s4254_s19   ;;  %s2912_s18 = sphi %s2963_s18, %s4253_s18   ;;  %s2908_s17 = sphi %s2961_s17, %s4252_s17   ;;  %s2904_s16 = sphi %s2959_s16, %s4251_s16   ;;  %s2900_s15 = sphi %s2957_s15, %s4250_s15  }
   0x5   : > { %s29_s23 = sadd.s32 1, %s2916_s19  ;;  %s127_s24 = sadd.s32 1, %s2908_s17 }
   0x6   : > { %p31_p0 = scmp.ge.s32.totalorder %s29_s23, 2  ;;  %p137_p1 = scmp.ne.s32.totalorder %s2908_s17, %s2904_s16 }
   0x7   : > { %p138_p2 = scmp.eq.s32.totalorder %s2434_s21, 1  ;;  %p143_p3 = scmp.ne.s32.totalorder %s2904_s16, %s2900_s15 }
   0x8   : > { %s4256_s23 = smov (%p31_p0, %s29_s23), 0  ;;  %p144_p5 = scmp.eq.s32.totalorder %s2435_s22, 1 }
   0x9   : > { %p2997_p4 = por %p138_p2, %p137_p1  ;;  %s122_s26 = ssub.s32 %s2916_s19, %s4256_s23 }
   0xa   : > { %p2438_p6 = scmp.ge.s32.totalorder %s2920_s20, 1  ;;  %p125_p7 = scmp.eq.s32.totalorder %s122_s26, 0 }
   0xb   : > { %p3004_p8 = por %p144_p5, %p143_p3  ;;  %p179_p9 = scmp.lt.s32.totalorder %s2920_s20, 3 }
   0xc   : > { %s3010_s28 = scalar_select %p125_p7, %s2908_s17, %s127_s24  }
   0xd   : > { %p180_p10 = pnand %p2438_p6, %p179_p9 }
   0xf   : > { %183 = sbr.rel (%p180_p10) target bundleno = 875 (0x36b), region = 36 }
  0x14   : > { %p205_p11 = scmp.lt.s32.totalorder %s2912_s18, 1  ;;  %s2922_s8 = smov 4   ;;  %vm246_vm0 = vcmask 31744   ;;  %vm439_vm1 = vcmask 64544   ;;  %vm632_vm2 = vcmask 97344   ;;  %vm1963_vm3 = vcmask 1043456  }
  0x15   : > { %s2923_s9 = smov 8   ;;  %s2924_s10 = smov 12   ;;  %vm828_vm4 = vcmask 130144   ;;  %vm1021_vm5 = vcmask 162944   ;;  %vm1214_vm6 = vcmask 195744   ;;  %vm1410_vm7 = vcmask 228544  }
  0x16   : > { %s206_s29 = scalar_select %p205_p11, %s2912_s18, 1  ;;  %vm1603_vm8 = vcmask 261344   ;;  %vm1796_vm9 = vcmask 294144   ;;  %vm1866_vm10 = vcmask 293888  }
  0x17   : > { %s2925_s11 = smov 16   ;;  %s2926_s12 = smov 20  }
  0x18   : > { %s2779_s30 = smul.u32 432, %s206_s29  ;;  %s2927_s13 = smov 24  }
  0x19   : > { %s2928_s14 = smov 28   ;;  %s2929_s29 = smov 32  }
  0x1a   : > { %s3017_s7 = scalar_lea.vmem %s4216_s0, %s2779_s30  ;;  %s2673_s26 = sshll.u32 %s2912_s18, 12 }
  0x1b   : > { %v3020_v0 = vld [vmem:[%s3017_s7 + $0x19] sm:$0xff]  ;;  %v279_v1 = vld [vmem:[%s3017_s7 + $0x1] sm:$0xff]  ;;  %v280_v3 = vld [vmem:[%s3017_s7 + $0x9] sm:$0xff]  ;;  %s4160_s6 = scalar_lea.hbm %s4220_s4, %s2673_s26 }
  0x1c   : > { %347 = vrot.lane.b32.xlu1 %v3020_v0, %s2922_s8  ;;  %343 = vrot.lane.b32.xlu0 %v279_v1, %s2922_s8  ;;  %v3027_v2 = vld [vmem:[%s3017_s7 + $0x21] sm:$0xff]  ;;  %v3034_v4 = vld [vmem:[%s3017_s7 + $0x39] sm:$0xff] }
  0x1d   : > { %v3037_v5 = vld [vmem:[%s3017_s7 + $0x31] sm:$0xff]  ;;  %v3047_v7 = vld [vmem:[%s3017_s7 + $0x49] sm:$0xff]  ;;  %v3057_v9 = vld [vmem:[%s3017_s7 + $0x61] sm:$0xff] }
  0x1e   : > { %v3044_v6 = vld [vmem:[%s3017_s7 + $0x51] sm:$0xff]  ;;  %v3054_v8 = vld [vmem:[%s3017_s7 + $0x69] sm:$0xff]  ;;  %v3064_v10 = vld [vmem:[%s3017_s7 + $0x81] sm:$0xff] }
  0x1f   : > { %v3067_v11 = vld [vmem:[%s3017_s7 + $0x79] sm:$0xff]  ;;  %v291_v15 = vld [vmem:[%s3017_s7 + $0x91] sm:$0xff]  ;;  %v215_v17 = vld [vmem:[%s3017_s7 + $0x8] sm:$0xff] }
  0x20   : > { %349 = vrot.lane.b32.xlu1 %v3027_v2, %s2922_s8  ;;  %345 = vrot.lane.b32.xlu0 %v280_v3, %s2922_s8  ;;  %v3074_v12 = vld [vmem:[%s3017_s7 + $0x18] sm:$0xff]  ;;  %v214_v13 = vld [vmem:[%s3017_s7] sm:$0xff]  ;;  %248 = vst.msk [vmem:[#allocation2 + $0x8] sm:$0xff] %vm246_vm0, %v215_v17 }
  0x21   : > { %v292_v14 = vld [vmem:[%s3017_s7 + $0x99] sm:$0xff]  ;;  %249 = vst.msk [vmem:[#allocation2 + $0x10] sm:$0xff] %vm246_vm0, %v3074_v12  ;;  %247 = vst.msk [vmem:[#allocation2] sm:$0xff] %vm246_vm0, %v214_v13  ;;  %v294_v18 = vld [vmem:[%s3017_s7 + $0xb1] sm:$0xff] }
  0x22   : > { %v3083_v16 = vld [vmem:[%s3017_s7 + $0x20] sm:$0xff]  ;;  %v3091_v19 = vld [vmem:[%s3017_s7 + $0x38] sm:$0xff]  ;;  %v3094_v20 = vld [vmem:[%s3017_s7 + $0x30] sm:$0xff] }
  0x23   : > { %250 = vst.msk [vmem:[#allocation2 + $0x18] sm:$0xff] %vm246_vm0, %v3083_v16  ;;  %v293_v21 = vld [vmem:[%s3017_s7 + $0xa9] sm:$0xff]  ;;  %252 = vst.msk [vmem:[#allocation2 + $0x28] sm:$0xff] %vm246_vm0, %v3091_v19  ;;  %v3115_v25 = vld [vmem:[%s3017_s7 + $0x60] sm:$0xff] }
  0x24   : > { %353 = vrot.lane.b32.xlu1 %v3034_v4, %s2922_s8  ;;  %351 = vrot.lane.b32.xlu0 %v3037_v5, %s2922_s8  ;;  %251 = vst.msk [vmem:[#allocation2 + $0x20] sm:$0xff] %vm246_vm0, %v3094_v20  ;;  %v3104_v22 = vld [vmem:[%s3017_s7 + $0x50] sm:$0xff]  ;;  %v3109_v23 = vld [vmem:[%s3017_s7 + $0x48] sm:$0xff]  ;;  %255 = vst.msk [vmem:[#allocation2 + $0x40] sm:$0xff] %vm246_vm0, %v3115_v25 }
  0x25   : > { %254 = vst.msk [vmem:[#allocation2 + $0x38] sm:$0xff] %vm246_vm0, %v3104_v22  ;;  %v3112_v24 = vld [vmem:[%s3017_s7 + $0x68] sm:$0xff]  ;;  %253 = vst.msk [vmem:[#allocation2 + $0x30] sm:$0xff] %vm246_vm0, %v3109_v23  ;;  %v3124_v26 = vld [vmem:[%s3017_s7 + $0x80] sm:$0xff] }
  0x26   : > { %256 = vst.msk [vmem:[#allocation2 + $0x48] sm:$0xff] %vm246_vm0, %v3112_v24  ;;  %v3127_v27 = vld [vmem:[%s3017_s7 + $0x78] sm:$0xff]  ;;  %v296_v29 = vld [vmem:[%s3017_s7 + $0xc9] sm:$0xff]  ;;  %v295_v30 = vld [vmem:[%s3017_s7 + $0xc1] sm:$0xff] }
  0x27   : > { %v3130_v28 = vld [vmem:[%s3017_s7 + $0x98] sm:$0xff]  ;;  %258 = vst.msk [vmem:[#allocation2 + $0x58] sm:$0xff] %vm246_vm0, %v3124_v26  ;;  %257 = vst.msk [vmem:[#allocation2 + $0x50] sm:$0xff] %vm246_vm0, %v3127_v27  ;;  %v3141_v31 = vld [vmem:[%s3017_s7 + $0x90] sm:$0xff] }
  0x28   : > { %357 = vrot.lane.b32.xlu1 %v3044_v6, %s2922_s8  ;;  %355 = vrot.lane.b32.xlu0 %v3047_v7, %s2922_s8  ;;  %260 = vst.msk [vmem:[#allocation2 + $0x68] sm:$0xff] %vm246_vm0, %v3130_v28  ;;  %v3144_v32 = vld [vmem:[%s3017_s7 + $0xb0] sm:$0xff]  ;;  %v3147_v33 = vld [vmem:[%s3017_s7 + $0xa8] sm:$0xff]  ;;  %259 = vst.msk [vmem:[#allocation2 + $0x60] sm:$0xff] %vm246_vm0, %v3141_v31 }
  0x29   : > { %262 = vst.msk [vmem:[#allocation2 + $0x78] sm:$0xff] %vm246_vm0, %v3144_v32  ;;  %261 = vst.msk [vmem:[#allocation2 + $0x70] sm:$0xff] %vm246_vm0, %v3147_v33  ;;  %v3158_v34 = vld [vmem:[%s3017_s7 + $0xc8] sm:$0xff]  ;;  %v3161_v35 = vld [vmem:[%s3017_s7 + $0xc0] sm:$0xff] }
  0x2a   : > { %264 = vst.msk [vmem:[#allocation2 + $0x88] sm:$0xff] %vm246_vm0, %v3158_v34  ;;  %263 = vst.msk [vmem:[#allocation2 + $0x80] sm:$0xff] %vm246_vm0, %v3161_v35  ;;  %v3168_v36 = vld [vmem:[%s3017_s7 + $0xe0] sm:$0xff]  ;;  %v3171_v37 = vld [vmem:[%s3017_s7 + $0xd8] sm:$0xff] }
  0x2b   : > { %v3174_v38 = vld [vmem:[%s3017_s7 + $0xf8] sm:$0xff]  ;;  %266 = vst.msk [vmem:[#allocation2 + $0x98] sm:$0xff] %vm246_vm0, %v3168_v36  ;;  %265 = vst.msk [vmem:[#allocation2 + $0x90] sm:$0xff] %vm246_vm0, %v3171_v37  ;;  %v3183_v39 = vld [vmem:[%s3017_s7 + $0xf0] sm:$0xff] }
  0x2c   : > { %361 = vrot.lane.b32.xlu1 %v3054_v8, %s2922_s8  ;;  %359 = vrot.lane.b32.xlu0 %v3057_v9, %s2922_s8  ;;  %268 = vst.msk [vmem:[#allocation2 + $0xa8] sm:$0xff] %vm246_vm0, %v3174_v38  ;;  %v3186_v40 = vld [vmem:[%s3017_s7 + $0x110] sm:$0xff]  ;;  %v3189_v41 = vld [vmem:[%s3017_s7 + $0x108] sm:$0xff]  ;;  %267 = vst.msk [vmem:[#allocation2 + $0xa0] sm:$0xff] %vm246_vm0, %v3183_v39 }
  0x2d   : > { %270 = vst.msk [vmem:[#allocation2 + $0xb8] sm:$0xff] %vm246_vm0, %v3186_v40  ;;  %269 = vst.msk [vmem:[#allocation2 + $0xb0] sm:$0xff] %vm246_vm0, %v3189_v41  ;;  %v3200_v42 = vld [vmem:[%s3017_s7 + $0xe1] sm:$0xff]  ;;  %v3203_v43 = vld [vmem:[%s3017_s7 + $0xd9] sm:$0xff] }
  0x2e   : > { %v3206_v44 = vld [vmem:[%s3017_s7 + $0x128] sm:$0xff]  ;;  %v3209_v45 = vld [vmem:[%s3017_s7 + $0x120] sm:$0xff]  ;;  %v3223_v47 = vld [vmem:[%s3017_s7 + $0xf1] sm:$0xff] }
  0x2f   : > { %272 = vst.msk [vmem:[#allocation2 + $0xc8] sm:$0xff] %vm246_vm0, %v3206_v44  ;;  %271 = vst.msk [vmem:[#allocation2 + $0xc0] sm:$0xff] %vm246_vm0, %v3209_v45  ;;  %v3220_v46 = vld [vmem:[%s3017_s7 + $0xf9] sm:$0xff]  ;;  %v3240_v50 = vld [vmem:[%s3017_s7 + $0x111] sm:$0xff] }
  0x30   : > { %365 = vrot.lane.b32.xlu1 %v3064_v10, %s2922_s8  ;;  %363 = vrot.lane.b32.xlu0 %v3067_v11, %s2922_s8  ;;  %v3226_v48 = vld [vmem:[%s3017_s7 + $0x140] sm:$0xff]  ;;  %v3229_v49 = vld [vmem:[%s3017_s7 + $0x138] sm:$0xff]  ;;  %4236 = vst [vmem:[#allocation6_spill] sm:$0xff] %v3240_v50 }
  0x31   : > { %274 = vst.msk [vmem:[#allocation2 + $0xd8] sm:$0xff] %vm246_vm0, %v3226_v48  ;;  %273 = vst.msk [vmem:[#allocation2 + $0xd0] sm:$0xff] %vm246_vm0, %v3229_v49  ;;  %v3243_v51 = vld [vmem:[%s3017_s7 + $0x109] sm:$0xff]  ;;  %v3246_v52 = vld [vmem:[%s3017_s7 + $0x158] sm:$0xff] }
  0x32   : > { %v3249_v53 = vld [vmem:[%s3017_s7 + $0x150] sm:$0xff]  ;;  %276 = vst.msk [vmem:[#allocation2 + $0xe8] sm:$0xff] %vm246_vm0, %v3246_v52  ;;  %v303_v55 = vld [vmem:[%s3017_s7 + $0x121] sm:$0xff]  ;;  %v305_v59 = vld [vmem:[%s3017_s7 + $0x139] sm:$0xff] }
  0x33   : > { %275 = vst.msk [vmem:[#allocation2 + $0xe0] sm:$0xff] %vm246_vm0, %v3249_v53  ;;  %v304_v54 = vld [vmem:[%s3017_s7 + $0x129] sm:$0xff]  ;;  %v306_v58 = vld [vmem:[%s3017_s7 + $0x141] sm:$0xff]  ;;  %v308_v60 = vld [vmem:[%s3017_s7 + $0x159] sm:$0xff] }
  0x34   : > { %369 = vrot.lane.b32.xlu1 %v292_v14, %s2922_s8  ;;  %367 = vrot.lane.b32.xlu0 %v291_v15, %s2922_s8  ;;  %v3262_v56 = vld [vmem:[%s3017_s7 + $0x170] sm:$0xff]  ;;  %v3265_v57 = vld [vmem:[%s3017_s7 + $0x168] sm:$0xff] }
  0x35   : > { %278 = vst.msk [vmem:[#allocation2 + $0xf8] sm:$0xff] %vm246_vm0, %v3262_v56  ;;  %277 = vst.msk [vmem:[#allocation2 + $0xf0] sm:$0xff] %vm246_vm0, %v3265_v57  ;;  %v307_v61 = vld [vmem:[%s3017_s7 + $0x151] sm:$0xff]  ;;  %v309_v63 = vld [vmem:[%s3017_s7 + $0x169] sm:$0xff] }
  0x36   : > { %v310_v62 = vld [vmem:[%s3017_s7 + $0x171] sm:$0xff]  ;;  %v472_v3 = vld [vmem:[%s3017_s7 + $0x2] sm:$0xff]  ;;  %v3293_v14 = vld [vmem:[%s3017_s7 + $0x1a] sm:$0xff] }
  0x37   : > { %v473_v1 = vld [vmem:[%s3017_s7 + $0xa] sm:$0xff]  ;;  %v3290_v13 = vld [vmem:[%s3017_s7 + $0x22] sm:$0xff]  ;;  %v3300_v15 = vld [vmem:[%s3017_s7 + $0x3a] sm:$0xff] }
  0x38   : > { %373 = vrot.lane.b32.xlu1 %v294_v18, %s2922_s8  ;;  %371 = vrot.lane.b32.xlu0 %v293_v21, %s2922_s8  ;;  %v3303_v17 = vld [vmem:[%s3017_s7 + $0x32] sm:$0xff]  ;;  %v3313_v21 = vld [vmem:[%s3017_s7 + $0x4a] sm:$0xff] }
  0x39   : > { %v3310_v18 = vld [vmem:[%s3017_s7 + $0x52] sm:$0xff] }
  0x3a   : > { %4237 = vst [vmem:[#allocation7_spill] sm:$0xff] %v3310_v18 }
  0x3c   : > { %377 = vrot.lane.b32.xlu1 %v296_v29, %s2922_s8  ;;  %375 = vrot.lane.b32.xlu0 %v295_v30, %s2922_s8  ;;  %v481_v29 = vld [vmem:[%s3017_s7 + $0x6a] sm:$0xff]  ;;  %v3321_v30 = vld [vmem:[%s3017_s7 + $0x62] sm:$0xff] }
  0x3d   : > { %4238 = vst [vmem:[#allocation8_spill] sm:$0xff] %v3321_v30 }
  0x40   : > { %381 = vrot.lane.b32.xlu1 %v3200_v42, %s2922_s8  ;;  %379 = vrot.lane.b32.xlu0 %v3203_v43, %s2922_s8 }
  0x44   : > { %385 = vrot.lane.b32.xlu1 %v3220_v46, %s2922_s8  ;;  %383 = vrot.lane.b32.xlu0 %v3223_v47, %s2922_s8 }
  0x48   : > { %389 = vrot.lane.b32.xlu1 %v3240_v50, %s2922_s8  ;;  %387 = vrot.lane.b32.xlu0 %v3243_v51, %s2922_s8 }
  0x4c   : > { %393 = vrot.lane.b32.xlu1 %v304_v54, %s2922_s8  ;;  %391 = vrot.lane.b32.xlu0 %v303_v55, %s2922_s8  ;;  %v483_v54 = vld [vmem:[%s3017_s7 + $0x82] sm:$0xff]  ;;  %v482_v55 = vld [vmem:[%s3017_s7 + $0x7a] sm:$0xff] }
  0x50   : > { %397 = vrot.lane.b32.xlu1 %v306_v58, %s2922_s8  ;;  %395 = vrot.lane.b32.xlu0 %v305_v59, %s2922_s8  ;;  %v485_v58 = vld [vmem:[%s3017_s7 + $0x9a] sm:$0xff]  ;;  %v484_v59 = vld [vmem:[%s3017_s7 + $0x92] sm:$0xff] }
  0x54   : > { %401 = vrot.lane.b32.xlu1 %v308_v60, %s2922_s8  ;;  %399 = vrot.lane.b32.xlu0 %v307_v61, %s2922_s8  ;;  %v487_v60 = vld [vmem:[%s3017_s7 + $0xb2] sm:$0xff]  ;;  %v486_v61 = vld [vmem:[%s3017_s7 + $0xaa] sm:$0xff] }
  0x58   : > { %405 = vrot.lane.b32.xlu1 %v310_v62, %s2922_s8  ;;  %403 = vrot.lane.b32.xlu0 %v309_v63, %s2922_s8  ;;  %v489_v62 = vld [vmem:[%s3017_s7 + $0xca] sm:$0xff]  ;;  %v488_v63 = vld [vmem:[%s3017_s7 + $0xc2] sm:$0xff] }
  0x5c   : > { %538 = vrot.lane.b32.xlu1 %v473_v1, %s2923_s9  ;;  %536 = vrot.lane.b32.xlu0 %v472_v3, %s2923_s9  ;;  %v3343_v1 = vld [vmem:[%s3017_s7 + $0xe2] sm:$0xff]  ;;  %v3346_v3 = vld [vmem:[%s3017_s7 + $0xda] sm:$0xff] }
  0x60   : > { %542 = vrot.lane.b32.xlu1 %v3290_v13, %s2923_s9  ;;  %540 = vrot.lane.b32.xlu0 %v3293_v14, %s2923_s9 }
  0x64   : > { %546 = vrot.lane.b32.xlu1 %v3300_v15, %s2923_s9  ;;  %544 = vrot.lane.b32.xlu0 %v3303_v17, %s2923_s9 }
  0x68   : > { %550 = vrot.lane.b32.xlu1 %v3310_v18, %s2923_s9  ;;  %548 = vrot.lane.b32.xlu0 %v3313_v21, %s2923_s9  ;;  %v501_v18 = vld [vmem:[%s3017_s7 + $0x15a] sm:$0xff] }
  0x6c   : > { %554 = vrot.lane.b32.xlu1 %v481_v29, %s2923_s9  ;;  %552 = vrot.lane.b32.xlu0 %v3321_v30, %s2923_s9  ;;  %v3353_v29 = vld [vmem:[%s3017_s7 + $0xfa] sm:$0xff] }
  0x70   : > { %558 = vrot.lane.b32.xlu1 %v483_v54, %s2923_s9  ;;  %556 = vrot.lane.b32.xlu0 %v482_v55, %s2923_s9  ;;  %v3356_v54 = vld [vmem:[%s3017_s7 + $0xf2] sm:$0xff] }
  0x71   : > { %v3363_v55 = vld [vmem:[%s3017_s7 + $0x112] sm:$0xff] }
  0x72   : > { %4239 = vst [vmem:[#allocation9_spill] sm:$0xff] %v3363_v55 }
  0x74   : > { %562 = vrot.lane.b32.xlu1 %v485_v58, %s2923_s9  ;;  %560 = vrot.lane.b32.xlu0 %v484_v59, %s2923_s9  ;;  %v3366_v58 = vld [vmem:[%s3017_s7 + $0x10a] sm:$0xff] }
  0x75   : > { %4240 = vst [vmem:[#allocation10_spill] sm:$0xff] %v3366_v58  ;;  %v3373_v59 = vld [vmem:[%s3017_s7 + $0x12a] sm:$0xff] }
  0x76   : > { %4241 = vst [vmem:[#allocation11_spill] sm:$0xff] %v3373_v59 }
  0x78   : > { %566 = vrot.lane.b32.xlu1 %v487_v60, %s2923_s9  ;;  %564 = vrot.lane.b32.xlu0 %v486_v61, %s2923_s9  ;;  %v3376_v60 = vld [vmem:[%s3017_s7 + $0x122] sm:$0xff] }
  0x79   : > { %4242 = vst [vmem:[#allocation12_spill] sm:$0xff] %v3376_v60  ;;  %v499_v61 = vld [vmem:[%s3017_s7 + $0x142] sm:$0xff] }
  0x7c   : > { %570 = vrot.lane.b32.xlu1 %v489_v62, %s2923_s9  ;;  %568 = vrot.lane.b32.xlu0 %v488_v63, %s2923_s9  ;;  %v498_v62 = vld [vmem:[%s3017_s7 + $0x13a] sm:$0xff] }
  0x80   : > { %574 = vrot.lane.b32.xlu1 %v3343_v1, %s2923_s9  ;;  %572 = vrot.lane.b32.xlu0 %v3346_v3, %s2923_s9 }
  0x84   : > { %578 = vrot.lane.b32.xlu1 %v3353_v29, %s2923_s9  ;;  %576 = vrot.lane.b32.xlu0 %v3356_v54, %s2923_s9 }
  0x88   : > { %582 = vrot.lane.b32.xlu1 %v3363_v55, %s2923_s9  ;;  %580 = vrot.lane.b32.xlu0 %v3366_v58, %s2923_s9 }
  0x8c   : > { %586 = vrot.lane.b32.xlu1 %v3373_v59, %s2923_s9  ;;  %584 = vrot.lane.b32.xlu0 %v3376_v60, %s2923_s9  ;;  %v500_v59 = vld [vmem:[%s3017_s7 + $0x152] sm:$0xff] }
  0x8d   : > { %v503_v60 = vld [vmem:[%s3017_s7 + $0x172] sm:$0xff] }
  0x8e   : > { %v348_v63 = vpop.permute.xlu1 %347  ;;  %v344_v30 = vpop.permute.xlu0 %343 }
  0x8f   : > { %442 = vst.msk [vmem:[#allocation2 + $0x10] sm:$0xff] %vm439_vm1, %v348_v63  ;;  %440 = vst.msk [vmem:[#allocation2] sm:$0xff] %vm439_vm1, %v344_v30  ;;  %v502_v63 = vld [vmem:[%s3017_s7 + $0x16a] sm:$0xff] }
  0x90   : > { %590 = vrot.lane.b32.xlu1 %v499_v61, %s2923_s9  ;;  %588 = vrot.lane.b32.xlu0 %v498_v62, %s2923_s9 }
  0x92   : > { %v350_v55 = vpop.permute.xlu1 %349  ;;  %v346_v58 = vpop.permute.xlu0 %345 }
  0x93   : > { %443 = vst.msk [vmem:[#allocation2 + $0x18] sm:$0xff] %vm439_vm1, %v350_v55  ;;  %441 = vst.msk [vmem:[#allocation2 + $0x8] sm:$0xff] %vm439_vm1, %v346_v58 }
  0x94   : > { %594 = vrot.lane.b32.xlu1 %v501_v18, %s2923_s9  ;;  %592 = vrot.lane.b32.xlu0 %v500_v59, %s2923_s9 }
  0x96   : > { %v354_v50 = vpop.permute.xlu1 %353  ;;  %v352_v30 = vpop.permute.xlu0 %351 }
  0x97   : > { %445 = vst.msk [vmem:[#allocation2 + $0x28] sm:$0xff] %vm439_vm1, %v354_v50  ;;  %444 = vst.msk [vmem:[#allocation2 + $0x20] sm:$0xff] %vm439_vm1, %v352_v30 }
  0x98   : > { %598 = vrot.lane.b32.xlu1 %v503_v60, %s2923_s9  ;;  %596 = vrot.lane.b32.xlu0 %v502_v63, %s2923_s9 }
  0x9a   : > { %v358_v61 = vpop.permute.xlu1 %357  ;;  %v356_v55 = vpop.permute.xlu0 %355 }
  0x9b   : > { %447 = vst.msk [vmem:[#allocation2 + $0x38] sm:$0xff] %vm439_vm1, %v358_v61  ;;  %446 = vst.msk [vmem:[#allocation2 + $0x30] sm:$0xff] %vm439_vm1, %v356_v55 }
  0x9c   : > { %734 = vrot.lane.b32.xlu1 %v3083_v16, %s2924_s10  ;;  %732 = vrot.lane.b32.xlu0 %v3074_v12, %s2924_s10 }
  0x9e   : > { %v362_v50 = vpop.permute.xlu1 %361  ;;  %v360_v18 = vpop.permute.xlu0 %359 }
  0x9f   : > { %449 = vst.msk [vmem:[#allocation2 + $0x48] sm:$0xff] %vm439_vm1, %v362_v50  ;;  %448 = vst.msk [vmem:[#allocation2 + $0x40] sm:$0xff] %vm439_vm1, %v360_v18 }
  0xa0   : > { %738 = vrot.lane.b32.xlu1 %v3091_v19, %s2924_s10  ;;  %736 = vrot.lane.b32.xlu0 %v3094_v20, %s2924_s10 }
  0xa2   : > { %v366_v58 = vpop.permute.xlu1 %365  ;;  %v364_v59 = vpop.permute.xlu0 %363 }
  0xa3   : > { %451 = vst.msk [vmem:[#allocation2 + $0x58] sm:$0xff] %vm439_vm1, %v366_v58  ;;  %450 = vst.msk [vmem:[#allocation2 + $0x50] sm:$0xff] %vm439_vm1, %v364_v59 }
  0xa4   : > { %742 = vrot.lane.b32.xlu1 %v3104_v22, %s2924_s10  ;;  %740 = vrot.lane.b32.xlu0 %v3109_v23, %s2924_s10 }
  0xa6   : > { %v370_v12 = vpop.permute.xlu1 %369  ;;  %v368_v16 = vpop.permute.xlu0 %367 }
  0xa7   : > { %453 = vst.msk [vmem:[#allocation2 + $0x68] sm:$0xff] %vm439_vm1, %v370_v12  ;;  %452 = vst.msk [vmem:[#allocation2 + $0x60] sm:$0xff] %vm439_vm1, %v368_v16 }
  0xa8   : > { %746 = vrot.lane.b32.xlu1 %v3112_v24, %s2924_s10  ;;  %744 = vrot.lane.b32.xlu0 %v3115_v25, %s2924_s10 }
  0xaa   : > { %v374_v60 = vpop.permute.xlu1 %373  ;;  %v372_v62 = vpop.permute.xlu0 %371 }
  0xab   : > { %455 = vst.msk [vmem:[#allocation2 + $0x78] sm:$0xff] %vm439_vm1, %v374_v60  ;;  %454 = vst.msk [vmem:[#allocation2 + $0x70] sm:$0xff] %vm439_vm1, %v372_v62 }
  0xac   : > { %750 = vrot.lane.b32.xlu1 %v3124_v26, %s2924_s10  ;;  %748 = vrot.lane.b32.xlu0 %v3127_v27, %s2924_s10 }
  0xae   : > { %v378_v63 = vpop.permute.xlu1 %377  ;;  %v376_v30 = vpop.permute.xlu0 %375 }
  0xaf   : > { %457 = vst.msk [vmem:[#allocation2 + $0x88] sm:$0xff] %vm439_vm1, %v378_v63  ;;  %456 = vst.msk [vmem:[#allocation2 + $0x80] sm:$0xff] %vm439_vm1, %v376_v30  ;;  %v2472_v63 = vld [vmem:[%s3017_s7 + $0x188] sm:$0xff]  ;;  %v2471_v30 = vld [vmem:[%s3017_s7 + $0x180] sm:$0xff] }
  0xb0   : > { %754 = vrot.lane.b32.xlu1 %v3130_v28, %s2924_s10  ;;  %752 = vrot.lane.b32.xlu0 %v3141_v31, %s2924_s10 }
  0xb2   : > { %v382_v61 = vpop.permute.xlu1 %381  ;;  %v380_v55 = vpop.permute.xlu0 %379 }
  0xb3   : > { %459 = vst.msk [vmem:[#allocation2 + $0x98] sm:$0xff] %vm439_vm1, %v382_v61  ;;  %458 = vst.msk [vmem:[#allocation2 + $0x90] sm:$0xff] %vm439_vm1, %v380_v55 }
  0xb4   : > { %758 = vrot.lane.b32.xlu1 %v3144_v32, %s2924_s10  ;;  %756 = vrot.lane.b32.xlu0 %v3147_v33, %s2924_s10 }
  0xb6   : > { %v386_v50 = vpop.permute.xlu1 %385  ;;  %v384_v18 = vpop.permute.xlu0 %383 }
  0xb7   : > { %461 = vst.msk [vmem:[#allocation2 + $0xa8] sm:$0xff] %vm439_vm1, %v386_v50  ;;  %460 = vst.msk [vmem:[#allocation2 + $0xa0] sm:$0xff] %vm439_vm1, %v384_v18 }
  0xb8   : > { %762 = vrot.lane.b32.xlu1 %v3158_v34, %s2924_s10  ;;  %760 = vrot.lane.b32.xlu0 %v3161_v35, %s2924_s10 }
  0xba   : > { %v390_v28 = vpop.permute.xlu1 %389  ;;  %v388_v31 = vpop.permute.xlu0 %387 }
  0xbb   : > { %463 = vst.msk [vmem:[#allocation2 + $0xb8] sm:$0xff] %vm439_vm1, %v390_v28  ;;  %462 = vst.msk [vmem:[#allocation2 + $0xb0] sm:$0xff] %vm439_vm1, %v388_v31 }
  0xbc   : > { %766 = vrot.lane.b32.xlu1 %v3168_v36, %s2924_s10  ;;  %764 = vrot.lane.b32.xlu0 %v3171_v37, %s2924_s10 }
  0xbe   : > { %v394_v32 = vpop.permute.xlu1 %393  ;;  %v392_v33 = vpop.permute.xlu0 %391 }
  0xbf   : > { %465 = vst.msk [vmem:[#allocation2 + $0xc8] sm:$0xff] %vm439_vm1, %v394_v32  ;;  %464 = vst.msk [vmem:[#allocation2 + $0xc0] sm:$0xff] %vm439_vm1, %v392_v33 }
  0xc0   : > { %770 = vrot.lane.b32.xlu1 %v3174_v38, %s2924_s10  ;;  %768 = vrot.lane.b32.xlu0 %v3183_v39, %s2924_s10 }
  0xc2   : > { %v398_v34 = vpop.permute.xlu1 %397  ;;  %v396_v35 = vpop.permute.xlu0 %395 }
  0xc3   : > { %467 = vst.msk [vmem:[#allocation2 + $0xd8] sm:$0xff] %vm439_vm1, %v398_v34  ;;  %466 = vst.msk [vmem:[#allocation2 + $0xd0] sm:$0xff] %vm439_vm1, %v396_v35 }
  0xc4   : > { %774 = vrot.lane.b32.xlu1 %v3186_v40, %s2924_s10  ;;  %772 = vrot.lane.b32.xlu0 %v3189_v41, %s2924_s10 }
  0xc6   : > { %v402_v36 = vpop.permute.xlu1 %401  ;;  %v400_v37 = vpop.permute.xlu0 %399 }
  0xc7   : > { %469 = vst.msk [vmem:[#allocation2 + $0xe8] sm:$0xff] %vm439_vm1, %v402_v36  ;;  %468 = vst.msk [vmem:[#allocation2 + $0xe0] sm:$0xff] %vm439_vm1, %v400_v37  ;;  %v1864_v36 = vld [vmem:[%s4217_s1 + $0x18] sm:$0xff] }
  0xc8   : > { %778 = vrot.lane.b32.xlu1 %v3206_v44, %s2924_s10  ;;  %776 = vrot.lane.b32.xlu0 %v3209_v45, %s2924_s10 }
  0xca   : > { %v406_v58 = vpop.permute.xlu1 %405  ;;  %v404_v59 = vpop.permute.xlu0 %403 }
  0xcb   : > { %471 = vst.msk [vmem:[#allocation2 + $0xf8] sm:$0xff] %vm439_vm1, %v406_v58  ;;  %470 = vst.msk [vmem:[#allocation2 + $0xf0] sm:$0xff] %vm439_vm1, %v404_v59  ;;  %v1862_v58 = vld [vmem:[%s4217_s1 + $0x8] sm:$0xff]  ;;  %v1861_v59 = vld [vmem:[%s4217_s1] sm:$0xff] }
  0xcc   : > { %782 = vrot.lane.b32.xlu1 %v3226_v48, %s2924_s10  ;;  %780 = vrot.lane.b32.xlu0 %v3229_v49, %s2924_s10 }
  0xce   : > { %v539_v12 = vpop.permute.xlu1 %538  ;;  %v537_v16 = vpop.permute.xlu0 %536 }
  0xcf   : > { %634 = vst.msk [vmem:[#allocation2 + $0x8] sm:$0xff] %vm632_vm2, %v539_v12  ;;  %633 = vst.msk [vmem:[#allocation2] sm:$0xff] %vm632_vm2, %v537_v16 }
  0xd0   : > { %786 = vrot.lane.b32.xlu1 %v3246_v52, %s2924_s10  ;;  %784 = vrot.lane.b32.xlu0 %v3249_v53, %s2924_s10 }
  0xd2   : > { %v543_v60 = vpop.permute.xlu1 %542  ;;  %v541_v62 = vpop.permute.xlu0 %540 }
  0xd3   : > { %636 = vst.msk [vmem:[#allocation2 + $0x18] sm:$0xff] %vm632_vm2, %v543_v60  ;;  %635 = vst.msk [vmem:[#allocation2 + $0x10] sm:$0xff] %vm632_vm2, %v541_v62 }
  0xd4   : > { %790 = vrot.lane.b32.xlu1 %v3262_v56, %s2924_s10  ;;  %788 = vrot.lane.b32.xlu0 %v3265_v57, %s2924_s10 }
  0xd6   : > { %v547_v61 = vpop.permute.xlu1 %546  ;;  %v545_v55 = vpop.permute.xlu0 %544 }
  0xd7   : > { %638 = vst.msk [vmem:[#allocation2 + $0x28] sm:$0xff] %vm632_vm2, %v547_v61  ;;  %637 = vst.msk [vmem:[#allocation2 + $0x20] sm:$0xff] %vm632_vm2, %v545_v55 }
  0xd8   : > { %794 = vrot.lane.b32.xlu1 %v2472_v63, %s2924_s10  ;;  %792 = vrot.lane.b32.xlu0 %v2471_v30, %s2924_s10  ;;  %s2930_s10 = smov [#allocation3]  }
  0xd9   : > { %s2848_s21 = sshll.u32 %s2930_s10, 4  ;;  %s2849_s21 = int_to_ptr.vmem [resolvable:$false] %s2848_s21 }
  0xda   : > { %v551_v50 = vpop.permute.xlu1 %550  ;;  %v549_v18 = vpop.permute.xlu0 %548 }
  0xdb   : > { %640 = vst.msk [vmem:[#allocation2 + $0x38] sm:$0xff] %vm632_vm2, %v551_v50  ;;  %639 = vst.msk [vmem:[#allocation2 + $0x30] sm:$0xff] %vm632_vm2, %v549_v18 }
  0xdc   : > { %927 = vrot.lane.b32.xlu1 %v3027_v2, %s2925_s11  ;;  %925 = vrot.lane.b32.xlu0 %v3020_v0, %s2925_s11 }
  0xde   : > { %v555_v56 = vpop.permute.xlu1 %554  ;;  %v553_v57 = vpop.permute.xlu0 %552 }
  0xdf   : > { %642 = vst.msk [vmem:[#allocation2 + $0x48] sm:$0xff] %vm632_vm2, %v555_v56  ;;  %641 = vst.msk [vmem:[#allocation2 + $0x40] sm:$0xff] %vm632_vm2, %v553_v57 }
  0xe0   : > { %931 = vrot.lane.b32.xlu1 %v3034_v4, %s2925_s11  ;;  %929 = vrot.lane.b32.xlu0 %v3037_v5, %s2925_s11 }
  0xe2   : > { %v559_v28 = vpop.permute.xlu1 %558  ;;  %v557_v31 = vpop.permute.xlu0 %556 }
  0xe3   : > { %644 = vst.msk [vmem:[#allocation2 + $0x58] sm:$0xff] %vm632_vm2, %v559_v28  ;;  %643 = vst.msk [vmem:[#allocation2 + $0x50] sm:$0xff] %vm632_vm2, %v557_v31  ;;  %v4245_v28 = vld [vmem:[#allocation9_spill] sm:$0xff]  ;;  %v4246_v31 = vld [vmem:[#allocation7_spill] sm:$0xff] }
  0xe4   : > { %935 = vrot.lane.b32.xlu1 %v3044_v6, %s2925_s11  ;;  %933 = vrot.lane.b32.xlu0 %v3047_v7, %s2925_s11 }
  0xe6   : > { %v563_v0 = vpop.permute.xlu1 %562  ;;  %v561_v2 = vpop.permute.xlu0 %560 }
  0xe7   : > { %646 = vst.msk [vmem:[#allocation2 + $0x68] sm:$0xff] %vm632_vm2, %v563_v0  ;;  %645 = vst.msk [vmem:[#allocation2 + $0x60] sm:$0xff] %vm632_vm2, %v561_v2 }
  0xe8   : > { %939 = vrot.lane.b32.xlu1 %v3054_v8, %s2925_s11  ;;  %937 = vrot.lane.b32.xlu0 %v3057_v9, %s2925_s11 }
  0xea   : > { %v567_v32 = vpop.permute.xlu1 %566  ;;  %v565_v33 = vpop.permute.xlu0 %564 }
  0xeb   : > { %648 = vst.msk [vmem:[#allocation2 + $0x78] sm:$0xff] %vm632_vm2, %v567_v32  ;;  %647 = vst.msk [vmem:[#allocation2 + $0x70] sm:$0xff] %vm632_vm2, %v565_v33 }
  0xec   : > { %943 = vrot.lane.b32.xlu1 %v3064_v10, %s2925_s11  ;;  %941 = vrot.lane.b32.xlu0 %v3067_v11, %s2925_s11 }
  0xee   : > { %v571_v34 = vpop.permute.xlu1 %570  ;;  %v569_v35 = vpop.permute.xlu0 %568 }
  0xef   : > { %650 = vst.msk [vmem:[#allocation2 + $0x88] sm:$0xff] %vm632_vm2, %v571_v34  ;;  %649 = vst.msk [vmem:[#allocation2 + $0x80] sm:$0xff] %vm632_vm2, %v569_v35  ;;  %v2589_v35 = vld [vmem:[%s3017_s7 + $0x121] sm:$0xff] }
  0xf0   : > { %959 = vrot.lane.b32.xlu1 %v3200_v42, %s2925_s11  ;;  %957 = vrot.lane.b32.xlu0 %v3203_v43, %s2925_s11 }
  0xf2   : > { %v575_v8 = vpop.permute.xlu1 %574  ;;  %v573_v9 = vpop.permute.xlu0 %572 }
  0xf3   : > { %652 = vst.msk [vmem:[#allocation2 + $0x98] sm:$0xff] %vm632_vm2, %v575_v8  ;;  %651 = vst.msk [vmem:[#allocation2 + $0x90] sm:$0xff] %vm632_vm2, %v573_v9  ;;  %v2573_v8 = vld [vmem:[%s3017_s7 + $0x61] sm:$0xff] }
  0xf4   : > { %1150 = vrot.lane.b32.xlu1 %v3346_v3, %s2926_s12  ;;  %1118 = vrot.lane.b32.xlu0 %v3293_v14, %s2926_s12 }
  0xf6   : > { %v579_v10 = vpop.permute.xlu1 %578  ;;  %v577_v11 = vpop.permute.xlu0 %576 }
  0xf7   : > { %654 = vst.msk [vmem:[#allocation2 + $0xa8] sm:$0xff] %vm632_vm2, %v579_v10  ;;  %653 = vst.msk [vmem:[#allocation2 + $0xa0] sm:$0xff] %vm632_vm2, %v577_v11 }
  0xf8   : > { %1152 = vrot.lane.b32.xlu1 %v3343_v1, %s2926_s12  ;;  %1120 = vrot.lane.b32.xlu0 %v3290_v13, %s2926_s12 }
  0xfa   : > { %v583_v42 = vpop.permute.xlu1 %582  ;;  %v581_v43 = vpop.permute.xlu0 %580 }
  0xfb   : > { %656 = vst.msk [vmem:[#allocation2 + $0xb8] sm:$0xff] %vm632_vm2, %v583_v42  ;;  %655 = vst.msk [vmem:[#allocation2 + $0xb0] sm:$0xff] %vm632_vm2, %v581_v43  ;;  %v4247_v43 = vld [vmem:[#allocation8_spill] sm:$0xff] }
  0xfc   : > { %1346 = vrot.lane.b32.xlu1 %v3183_v39, %s2927_s13  ;;  %1314 = vrot.lane.b32.xlu0 %v3094_v20, %s2927_s13 }
  0xfe   : > { %v587_v14 = vpop.permute.xlu1 %586  ;;  %v585_v3 = vpop.permute.xlu0 %584 }
  0xff   : > { %658 = vst.msk [vmem:[#allocation2 + $0xc8] sm:$0xff] %vm632_vm2, %v587_v14  ;;  %657 = vst.msk [vmem:[#allocation2 + $0xc0] sm:$0xff] %vm632_vm2, %v585_v3 }
 0x100   : > { %1348 = vrot.lane.b32.xlu1 %v3174_v38, %s2927_s13  ;;  %1316 = vrot.lane.b32.xlu0 %v3091_v19, %s2927_s13  ;;  %v1865_v19 = vld [vmem:[%s4217_s1 + $0x20] sm:$0xf] }
 0x101   : > { %2711 = vmatprep.subr.msk.mxu0 %vm1963_vm3, %v1865_v19  ;;  %2769 = vmatprep.subr.msk.mxu1 %vm1963_vm3, %v1865_v19 }
 0x102   : > { %v591_v13 = vpop.permute.xlu1 %590  ;;  %v589_v1 = vpop.permute.xlu0 %588  ;;  %2712 = vmatpush3.msk.msra.mxu0 %vm1963_vm3, %v1865_v19  ;;  %2774 = vmatpush3.msk.msra.mxu1 %vm1963_vm3, %v1865_v19  ;;  %v2606_v19 = vld [vmem:[%s3017_s7 + $0x6a] sm:$0xff] }
 0x103   : > { %660 = vst.msk [vmem:[#allocation2 + $0xd8] sm:$0xff] %vm632_vm2, %v591_v13  ;;  %659 = vst.msk [vmem:[#allocation2 + $0xd0] sm:$0xff] %vm632_vm2, %v589_v1  ;;  %2713 = vmatprep.subr.mxu0 %v1864_v36  ;;  %2770 = vmatprep.subr.mxu1 %v1864_v36  ;;  %v4248_v13 = vld [vmem:[#allocation12_spill] sm:$0xff]  ;;  %v2511_v1 = vld [vmem:[%s3017_s7 + $0x62] sm:$0xff] }
 0x104   : > { %1539 = vrot.lane.b32.xlu1 %v3223_v47, %s2928_s14  ;;  %1507 = vrot.lane.b32.xlu0 %v3037_v5, %s2928_s14 }
 0x105   : > { %2714 = vmatpush3.msra.mxu0 %v1864_v36  ;;  %2775 = vmatpush3.msra.mxu1 %v1864_v36  ;;  %v4249_v36 = vld [vmem:[#allocation11_spill] sm:$0xff] }
 0x106   : > { %v595_v20 = vpop.permute.xlu1 %594  ;;  %v593_v39 = vpop.permute.xlu0 %592 }
 0x107   : > { %662 = vst.msk [vmem:[#allocation2 + $0xe8] sm:$0xff] %vm632_vm2, %v595_v20  ;;  %661 = vst.msk [vmem:[#allocation2 + $0xe0] sm:$0xff] %vm632_vm2, %v593_v39 }
 0x108   : > { %1509 = vrot.lane.b32.xlu1 %v3034_v4, %s2928_s14  ;;  %961 = vrot.lane.b32.xlu0 %v3223_v47, %s2925_s11  ;;  %v1863_v4 = vld [vmem:[%s4217_s1 + $0x10] sm:$0xff] }
 0x109   : > { %2715 = vmatprep.subr.mxu0 %v1863_v4  ;;  %2771 = vmatprep.subr.mxu1 %v1863_v4 }
 0x10a   : > { %v599_v5 = vpop.permute.xlu1 %598  ;;  %v597_v38 = vpop.permute.xlu0 %596  ;;  %2716 = vmatpush3.msra.mxu0 %v1863_v4  ;;  %2776 = vmatpush3.msra.mxu1 %v1863_v4 }
 0x10b   : > { %664 = vst.msk [vmem:[#allocation2 + $0xf8] sm:$0xff] %vm632_vm2, %v599_v5  ;;  %663 = vst.msk [vmem:[#allocation2 + $0xf0] sm:$0xff] %vm632_vm2, %v597_v38  ;;  %2717 = vmatprep.subr.mxu0 %v1862_v58  ;;  %2772 = vmatprep.subr.mxu1 %v1862_v58 }
 0x10c   : > { %1700 = vrot.lane.b32.xlu1 %v3303_v17, %s2929_s29  ;;  %1541 = vrot.lane.b32.xlu0 %v3220_v46, %s2928_s14 }
 0x10d   : > { %2718 = vmatpush3.msra.mxu0 %v1862_v58  ;;  %2777 = vmatpush3.msra.mxu1 %v1862_v58 }
 0x10e   : > { %v735_v47 = vpop.permute.xlu1 %734  ;;  %v733_v37 = vpop.permute.xlu0 %732  ;;  %2719 = vmatprep.subr.mxu0 %v1861_v59  ;;  %2773 = vmatprep.subr.mxu1 %v1861_v59 }
 0x10f   : > { %830 = vst.msk [vmem:[#allocation2 + $0x8] sm:$0xff] %vm828_vm4, %v735_v47  ;;  %829 = vst.msk [vmem:[#allocation2] sm:$0xff] %vm828_vm4, %v733_v37  ;;  %2720 = vmatpush3.msra.mxu0 %v1861_v59  ;;  %2778 = vmatpush3.msra.mxu1 %v1861_v59 }
 0x110   : > { %963 = vrot.lane.b32.xlu1 %v3220_v46, %s2925_s11  ;;  %1732 = vrot.lane.b32.xlu0 %v3356_v54, %s2929_s29 }
 0x112   : > { %v739_v12 = vpop.permute.xlu1 %738  ;;  %v737_v16 = vpop.permute.xlu0 %736 }
 0x113   : > { %832 = vst.msk [vmem:[#allocation2 + $0x18] sm:$0xff] %vm828_vm4, %v739_v12  ;;  %831 = vst.msk [vmem:[#allocation2 + $0x10] sm:$0xff] %vm828_vm4, %v737_v16  ;;  %v2591_v16 = vld [vmem:[%s3017_s7 + $0x139] sm:$0xff] }
 0x114   : > { %1154 = vrot.lane.b32.xlu1 %v3356_v54, %s2926_s12  ;;  %1122 = vrot.lane.b32.xlu0 %v3303_v17, %s2926_s12 }
 0x116   : > { %v743_v46 = vpop.permute.xlu1 %742  ;;  %v741_v60 = vpop.permute.xlu0 %740 }
 0x117   : > { %834 = vst.msk [vmem:[#allocation2 + $0x28] sm:$0xff] %vm828_vm4, %v743_v46  ;;  %833 = vst.msk [vmem:[#allocation2 + $0x20] sm:$0xff] %vm828_vm4, %v741_v60  ;;  %v2576_v60 = vld [vmem:[%s3017_s7 + $0x81] sm:$0xff] }
 0x118   : > { %1734 = vrot.lane.b32.xlu1 %v3353_v29, %s2929_s29  ;;  %1702 = vrot.lane.b32.xlu0 %v3300_v15, %s2929_s29 }
 0x11a   : > { %v747_v62 = vpop.permute.xlu1 %746  ;;  %v745_v63 = vpop.permute.xlu0 %744 }
 0x11b   : > { %836 = vst.msk [vmem:[#allocation2 + $0x38] sm:$0xff] %vm828_vm4, %v747_v62  ;;  %835 = vst.msk [vmem:[#allocation2 + $0x30] sm:$0xff] %vm828_vm4, %v745_v63  ;;  %v2592_v63 = vld [vmem:[%s3017_s7 + $0x141] sm:$0xff] }
 0x11c   : > { %1156 = vrot.lane.b32.xlu1 %v3353_v29, %s2926_s12  ;;  %1124 = vrot.lane.b32.xlu0 %v3300_v15, %s2926_s12 }
 0x11e   : > { %v751_v17 = vpop.permute.xlu1 %750  ;;  %v749_v54 = vpop.permute.xlu0 %748 }
 0x11f   : > { %838 = vst.msk [vmem:[#allocation2 + $0x48] sm:$0xff] %vm828_vm4, %v751_v17  ;;  %837 = vst.msk [vmem:[#allocation2 + $0x40] sm:$0xff] %vm828_vm4, %v749_v54 }
 0x120   : > { %1350 = vrot.lane.b32.xlu1 %v3189_v41, %s2927_s13  ;;  %1318 = vrot.lane.b32.xlu0 %v3109_v23, %s2927_s13 }
 0x122   : > { %v755_v30 = vpop.permute.xlu1 %754  ;;  %v753_v61 = vpop.permute.xlu0 %752 }
 0x123   : > { %840 = vst.msk [vmem:[#allocation2 + $0x58] sm:$0xff] %vm828_vm4, %v755_v30  ;;  %839 = vst.msk [vmem:[#allocation2 + $0x50] sm:$0xff] %vm828_vm4, %v753_v61  ;;  %v2623_v30 = vld [vmem:[%s3017_s7 + $0x13a] sm:$0xff] }
 0x124   : > { %1352 = vrot.lane.b32.xlu1 %v3186_v40, %s2927_s13  ;;  %1320 = vrot.lane.b32.xlu0 %v3104_v22, %s2927_s13 }
 0x126   : > { %v759_v15 = vpop.permute.xlu1 %758  ;;  %v757_v29 = vpop.permute.xlu0 %756 }
 0x127   : > { %842 = vst.msk [vmem:[#allocation2 + $0x68] sm:$0xff] %vm828_vm4, %v759_v15  ;;  %841 = vst.msk [vmem:[#allocation2 + $0x60] sm:$0xff] %vm828_vm4, %v757_v29 }
 0x128   : > { %1543 = vrot.lane.b32.xlu1 %v3243_v51, %s2928_s14  ;;  %1511 = vrot.lane.b32.xlu0 %v3047_v7, %s2928_s14  ;;  %v4243_v7 = vld [vmem:[#allocation6_spill] sm:$0xff] }
 0x12a   : > { %v763_v23 = vpop.permute.xlu1 %762  ;;  %v761_v41 = vpop.permute.xlu0 %760 }
 0x12b   : > { %844 = vst.msk [vmem:[#allocation2 + $0x78] sm:$0xff] %vm828_vm4, %v763_v23  ;;  %843 = vst.msk [vmem:[#allocation2 + $0x70] sm:$0xff] %vm828_vm4, %v761_v41  ;;  %v2624_v41 = vld [vmem:[%s3017_s7 + $0x142] sm:$0xff] }
 0x12c   : > { %1513 = vrot.lane.b32.xlu1 %v3044_v6, %s2928_s14  ;;  %965 = vrot.lane.b32.xlu0 %v3243_v51, %s2925_s11  ;;  %v4244_v6 = vld [vmem:[#allocation10_spill] sm:$0xff] }
 0x12e   : > { %v767_v22 = vpop.permute.xlu1 %766  ;;  %v765_v40 = vpop.permute.xlu0 %764 }
 0x12f   : > { %846 = vst.msk [vmem:[#allocation2 + $0x88] sm:$0xff] %vm828_vm4, %v767_v22  ;;  %845 = vst.msk [vmem:[#allocation2 + $0x80] sm:$0xff] %vm828_vm4, %v765_v40  ;;  %v2608_v22 = vld [vmem:[%s3017_s7 + $0x82] sm:$0xff] }
 0x130   : > { %1704 = vrot.lane.b32.xlu1 %v3313_v21, %s2929_s29  ;;  %1545 = vrot.lane.b32.xlu0 %v4243_v7, %s2928_s14 }
 0x132   : > { %v771_v55 = vpop.permute.xlu1 %770  ;;  %v769_v50 = vpop.permute.xlu0 %768 }
 0x133   : > { %848 = vst.msk [vmem:[#allocation2 + $0x98] sm:$0xff] %vm828_vm4, %v771_v55  ;;  %847 = vst.msk [vmem:[#allocation2 + $0x90] sm:$0xff] %vm828_vm4, %v769_v50 }
 0x134   : > { %967 = vrot.lane.b32.xlu1 %v4243_v7, %s2925_s11  ;;  %1736 = vrot.lane.b32.xlu0 %v4244_v6, %s2929_s29 }
 0x136   : > { %v775_v51 = vpop.permute.xlu1 %774  ;;  %v773_v18 = vpop.permute.xlu0 %772 }
 0x137   : > { %850 = vst.msk [vmem:[#allocation2 + $0xa8] sm:$0xff] %vm828_vm4, %v775_v51  ;;  %849 = vst.msk [vmem:[#allocation2 + $0xa0] sm:$0xff] %vm828_vm4, %v773_v18  ;;  %v2545_v51 = vld [vmem:[%s3017_s7 + $0x90] sm:$0xff] }
 0x138   : > { %1158 = vrot.lane.b32.xlu1 %v4244_v6, %s2926_s12  ;;  %1126 = vrot.lane.b32.xlu0 %v3313_v21, %s2926_s12 }
 0x13a   : > { %v779_v56 = vpop.permute.xlu1 %778  ;;  %v777_v57 = vpop.permute.xlu0 %776 }
 0x13b   : > { %852 = vst.msk [vmem:[#allocation2 + $0xb8] sm:$0xff] %vm828_vm4, %v779_v56  ;;  %851 = vst.msk [vmem:[#allocation2 + $0xb0] sm:$0xff] %vm828_vm4, %v777_v57 }
 0x13c   : > { %1738 = vrot.lane.b32.xlu1 %v4245_v28, %s2929_s29  ;;  %1706 = vrot.lane.b32.xlu0 %v4246_v31, %s2929_s29 }
 0x13e   : > { %v783_v0 = vpop.permute.xlu1 %782  ;;  %v781_v2 = vpop.permute.xlu0 %780 }
 0x13f   : > { %854 = vst.msk [vmem:[#allocation2 + $0xc8] sm:$0xff] %vm828_vm4, %v783_v0  ;;  %853 = vst.msk [vmem:[#allocation2 + $0xc0] sm:$0xff] %vm828_vm4, %v781_v2  ;;  %v2593_v2 = vld [vmem:[%s3017_s7 + $0x151] sm:$0xff] }
 0x140   : > { %1160 = vrot.lane.b32.xlu1 %v4245_v28, %s2926_s12  ;;  %1128 = vrot.lane.b32.xlu0 %v4246_v31, %s2926_s12  ;;  %v2546_v28 = vld [vmem:[%s3017_s7 + $0x98] sm:$0xff] }
 0x142   : > { %v787_v21 = vpop.permute.xlu1 %786  ;;  %v785_v32 = vpop.permute.xlu0 %784 }
 0x143   : > { %856 = vst.msk [vmem:[#allocation2 + $0xd8] sm:$0xff] %vm828_vm4, %v787_v21  ;;  %855 = vst.msk [vmem:[#allocation2 + $0xd0] sm:$0xff] %vm828_vm4, %v785_v32  ;;  %v2577_v21 = vld [vmem:[%s3017_s7 + $0x91] sm:$0xff] }
 0x144   : > { %1354 = vrot.lane.b32.xlu1 %v3209_v45, %s2927_s13  ;;  %1322 = vrot.lane.b32.xlu0 %v3115_v25, %s2927_s13  ;;  %v2574_v25 = vld [vmem:[%s3017_s7 + $0x69] sm:$0xff] }
 0x146   : > { %v791_v33 = vpop.permute.xlu1 %790  ;;  %v789_v34 = vpop.permute.xlu0 %788 }
 0x147   : > { %858 = vst.msk [vmem:[#allocation2 + $0xe8] sm:$0xff] %vm828_vm4, %v791_v33  ;;  %857 = vst.msk [vmem:[#allocation2 + $0xe0] sm:$0xff] %vm828_vm4, %v789_v34 }
 0x148   : > { %1356 = vrot.lane.b32.xlu1 %v3206_v44, %s2927_s13  ;;  %1324 = vrot.lane.b32.xlu0 %v3112_v24, %s2927_s13  ;;  %v2590_v24 = vld [vmem:[%s3017_s7 + $0x129] sm:$0xff] }
 0x14a   : > { %v795_v45 = vpop.permute.xlu1 %794  ;;  %v793_v9 = vpop.permute.xlu0 %792 }
 0x14b   : > { %860 = vst.msk [vmem:[#allocation2 + $0xf8] sm:$0xff] %vm828_vm4, %v795_v45  ;;  %859 = vst.msk [vmem:[#allocation2 + $0xf0] sm:$0xff] %vm828_vm4, %v793_v9  ;;  %v2578_v45 = vld [vmem:[%s3017_s7 + $0x99] sm:$0xff] }
 0x14c   : > { %1547 = vrot.lane.b32.xlu1 %v2589_v35, %s2928_s14  ;;  %1515 = vrot.lane.b32.xlu0 %v2573_v8, %s2928_s14  ;;  %v2594_v8 = vld [vmem:[%s3017_s7 + $0x159] sm:$0xff] }
 0x14e   : > { %v928_v10 = vpop.permute.xlu1 %927  ;;  %v926_v44 = vpop.permute.xlu0 %925 }
 0x14f   : > { %1023 = vst.msk [vmem:[#allocation2 + $0x8] sm:$0xff] %vm1021_vm5, %v928_v10  ;;  %1022 = vst.msk [vmem:[#allocation2] sm:$0xff] %vm1021_vm5, %v926_v44  ;;  %v2625_v10 = vld [vmem:[%s3017_s7 + $0x152] sm:$0xff] }
 0x150   : > { %1517 = vrot.lane.b32.xlu1 %v2574_v25, %s2928_s14  ;;  %969 = vrot.lane.b32.xlu0 %v2589_v35, %s2925_s11  ;;  %v2609_v44 = vld [vmem:[%s3017_s7 + $0x92] sm:$0xff] }
 0x152   : > { %v932_v11 = vpop.permute.xlu1 %931  ;;  %v930_v42 = vpop.permute.xlu0 %929 }
 0x153   : > { %1025 = vst.msk [vmem:[#allocation2 + $0x18] sm:$0xff] %vm1021_vm5, %v932_v11  ;;  %1024 = vst.msk [vmem:[#allocation2 + $0x10] sm:$0xff] %vm1021_vm5, %v930_v42 }
 0x154   : > { %1708 = vrot.lane.b32.xlu1 %v4247_v43, %s2929_s29  ;;  %1549 = vrot.lane.b32.xlu0 %v2590_v24, %s2928_s14 }
 0x156   : > { %v936_v14 = vpop.permute.xlu1 %935  ;;  %v934_v3 = vpop.permute.xlu0 %933 }
 0x157   : > { %1027 = vst.msk [vmem:[#allocation2 + $0x28] sm:$0xff] %vm1021_vm5, %v936_v14  ;;  %1026 = vst.msk [vmem:[#allocation2 + $0x20] sm:$0xff] %vm1021_vm5, %v934_v3 }
 0x158   : > { %971 = vrot.lane.b32.xlu1 %v2590_v24, %s2925_s11  ;;  %1740 = vrot.lane.b32.xlu0 %v4248_v13, %s2929_s29 }
 0x15a   : > { %v940_v20 = vpop.permute.xlu1 %939  ;;  %v938_v39 = vpop.permute.xlu0 %937 }
 0x15b   : > { %1029 = vst.msk [vmem:[#allocation2 + $0x38] sm:$0xff] %vm1021_vm5, %v940_v20  ;;  %1028 = vst.msk [vmem:[#allocation2 + $0x30] sm:$0xff] %vm1021_vm5, %v938_v39 }
 0x15c   : > { %1162 = vrot.lane.b32.xlu1 %v4248_v13, %s2926_s12  ;;  %1130 = vrot.lane.b32.xlu0 %v2511_v1, %s2926_s12  ;;  %v2626_v13 = vld [vmem:[%s3017_s7 + $0x15a] sm:$0xff] }
 0x15d   : > { %v2610_v1 = vld [vmem:[%s3017_s7 + $0x9a] sm:$0xff] }
 0x15e   : > { %v944_v5 = vpop.permute.xlu1 %943  ;;  %v942_v38 = vpop.permute.xlu0 %941 }
 0x15f   : > { %1031 = vst.msk [vmem:[#allocation2 + $0x48] sm:$0xff] %vm1021_vm5, %v944_v5  ;;  %1030 = vst.msk [vmem:[#allocation2 + $0x40] sm:$0xff] %vm1021_vm5, %v942_v38 }
 0x160   : > { %1742 = vrot.lane.b32.xlu1 %v4249_v36, %s2929_s29  ;;  %1710 = vrot.lane.b32.xlu0 %v2606_v19, %s2929_s29 }
 0x162   : > { %v960_v4 = vpop.permute.xlu1 %959  ;;  %v958_v47 = vpop.permute.xlu0 %957 }
 0x163   : > { %1039 = vst.msk [vmem:[#allocation2 + $0x88] sm:$0xff] %vm1021_vm5, %v960_v4  ;;  %1038 = vst.msk [vmem:[#allocation2 + $0x80] sm:$0xff] %vm1021_vm5, %v958_v47  ;;  %v2563_v4 = vld [vmem:[%s3017_s7 + $0x168] sm:$0xff] }
 0x164   : > { %1164 = vrot.lane.b32.xlu1 %v4249_v36, %s2926_s12  ;;  %1132 = vrot.lane.b32.xlu0 %v2606_v19, %s2926_s12  ;;  %v2547_v47 = vld [vmem:[%s3017_s7 + $0xa8] sm:$0xff] }
 0x166   : > { %v1151_v37 = vpop.permute.xlu1 %1150  ;;  %v1119_v58 = vpop.permute.xlu0 %1118 }
 0x167   : > { %1231 = vst.msk [vmem:[#allocation2 + $0x80] sm:$0xff] %vm1214_vm6, %v1151_v37  ;;  %1215 = vst.msk [vmem:[#allocation2] sm:$0xff] %vm1214_vm6, %v1119_v58 }
 0x168   : > { %1358 = vrot.lane.b32.xlu1 %v3229_v49, %s2927_s13  ;;  %1326 = vrot.lane.b32.xlu0 %v3127_v27, %s2927_s13  ;;  %v2575_v49 = vld [vmem:[%s3017_s7 + $0x79] sm:$0xff] }
 0x16a   : > { %v1153_v59 = vpop.permute.xlu1 %1152  ;;  %v1121_v12 = vpop.permute.xlu0 %1120 }
 0x16b   : > { %1232 = vst.msk [vmem:[#allocation2 + $0x88] sm:$0xff] %vm1214_vm6, %v1153_v59  ;;  %1216 = vst.msk [vmem:[#allocation2 + $0x8] sm:$0xff] %vm1214_vm6, %v1121_v12  ;;  %v2564_v59 = vld [vmem:[%s3017_s7 + $0x170] sm:$0xff] }
 0x16c   : > { %1360 = vrot.lane.b32.xlu1 %v3226_v48, %s2927_s13  ;;  %1328 = vrot.lane.b32.xlu0 %v3124_v26, %s2927_s13  ;;  %v2607_v26 = vld [vmem:[%s3017_s7 + $0x7a] sm:$0xff]  ;;  %v2548_v12 = vld [vmem:[%s3017_s7 + $0xb0] sm:$0xff] }
 0x16e   : > { %v1347_v46 = vpop.permute.xlu1 %1346  ;;  %v1315_v27 = vpop.permute.xlu0 %1314 }
 0x16f   : > { %1427 = vst.msk [vmem:[#allocation2 + $0x80] sm:$0xff] %vm1410_vm7, %v1347_v46  ;;  %1411 = vst.msk [vmem:[#allocation2] sm:$0xff] %vm1410_vm7, %v1315_v27 }
 0x170   : > { %1551 = vrot.lane.b32.xlu1 %v2591_v16, %s2928_s14  ;;  %1519 = vrot.lane.b32.xlu0 %v2575_v49, %s2928_s14 }
 0x172   : > { %v1349_v48 = vpop.permute.xlu1 %1348  ;;  %v1317_v62 = vpop.permute.xlu0 %1316 }
 0x173   : > { %1428 = vst.msk [vmem:[#allocation2 + $0x88] sm:$0xff] %vm1410_vm7, %v1349_v48  ;;  %1412 = vst.msk [vmem:[#allocation2 + $0x8] sm:$0xff] %vm1410_vm7, %v1317_v62  ;;  %v2579_v48 = vld [vmem:[%s3017_s7 + $0xa9] sm:$0xff] }
 0x174   : > { %1521 = vrot.lane.b32.xlu1 %v2576_v60, %s2928_s14  ;;  %973 = vrot.lane.b32.xlu0 %v2591_v16, %s2925_s11  ;;  %v2595_v60 = vld [vmem:[%s3017_s7 + $0x169] sm:$0xff] }
 0x176   : > { %v1540_v17 = vpop.permute.xlu1 %1539  ;;  %v1508_v54 = vpop.permute.xlu0 %1507 }
 0x177   : > { %1620 = vst.msk [vmem:[#allocation2 + $0x80] sm:$0xff] %vm1603_vm8, %v1540_v17  ;;  %1604 = vst.msk [vmem:[#allocation2] sm:$0xff] %vm1603_vm8, %v1508_v54  ;;  %v2596_v54 = vld [vmem:[%s3017_s7 + $0x171] sm:$0xff] }
 0x178   : > { %1712 = vrot.lane.b32.xlu1 %v2607_v26, %s2929_s29  ;;  %1553 = vrot.lane.b32.xlu0 %v2592_v63, %s2928_s14 }
 0x17a   : > { %v1510_v61 = vpop.permute.xlu1 %1509  ;;  %v962_v15 = vpop.permute.xlu0 %961 }
 0x17b   : > { %1605 = vst.msk [vmem:[#allocation2 + $0x8] sm:$0xff] %vm1603_vm8, %v1510_v61 }
 0x17c   : > { %1040 = vst.msk [vmem:[#allocation2 + $0x90] sm:$0xff] %vm1021_vm5, %v962_v15  ;;  %975 = vrot.lane.b32.xlu1 %v2592_v63, %s2925_s11  ;;  %1744 = vrot.lane.b32.xlu0 %v2623_v30, %s2929_s29 }
 0x17e   : > { %v1701_v29 = vpop.permute.xlu1 %1700  ;;  %v1542_v23 = vpop.permute.xlu0 %1541 }
 0x17f   : > { %1797 = vst.msk [vmem:[#allocation2] sm:$0xff] %vm1796_vm9, %v1701_v29  ;;  %v2627_v29 = vld [vmem:[%s3017_s7 + $0x16a] sm:$0xff] }
 0x180   : > { %1621 = vst.msk [vmem:[#allocation2 + $0x88] sm:$0xff] %vm1603_vm8, %v1542_v23  ;;  %1166 = vrot.lane.b32.xlu1 %v2623_v30, %s2926_s12  ;;  %1134 = vrot.lane.b32.xlu0 %v2607_v26, %s2926_s12  ;;  %v2580_v30 = vld [vmem:[%s3017_s7 + $0xb1] sm:$0xff] }
 0x181   : > { %v2611_v23 = vld [vmem:[%s3017_s7 + $0xaa] sm:$0xff] }
 0x182   : > { %v964_v40 = vpop.permute.xlu1 %963  ;;  %v1733_v7 = vpop.permute.xlu0 %1732 }
 0x183   : > { %1041 = vst.msk [vmem:[#allocation2 + $0x98] sm:$0xff] %vm1021_vm5, %v964_v40 }
 0x184   : > { %1813 = vst.msk [vmem:[#allocation2 + $0x80] sm:$0xff] %vm1796_vm9, %v1733_v7  ;;  %1746 = vrot.lane.b32.xlu1 %v2624_v41, %s2929_s29  ;;  %1714 = vrot.lane.b32.xlu0 %v2608_v22, %s2929_s29 }
 0x186   : > { %v1155_v55 = vpop.permute.xlu1 %1154  ;;  %v1123_v50 = vpop.permute.xlu0 %1122  ;;  %v1829_v6 = vld [vmem:[#allocation2] sm:$0xff] }
 0x187   : > { %1233 = vst.msk [vmem:[#allocation2 + $0x90] sm:$0xff] %vm1214_vm6, %v1155_v55  ;;  %1217 = vst.msk [vmem:[#allocation2 + $0x10] sm:$0xff] %vm1214_vm6, %v1123_v50  ;;  %2721 = vmatprep.mubr.msk.f32.mxu0 %vm1866_vm10, %v1829_v6 }
 0x188   : > { %1168 = vrot.lane.b32.xlu1 %v2624_v41, %s2926_s12  ;;  %1136 = vrot.lane.b32.xlu0 %v2608_v22, %s2926_s12 }
 0x18a   : > { %v1735_v18 = vpop.permute.xlu1 %1734  ;;  %v1703_v56 = vpop.permute.xlu0 %1702 }
 0x18b   : > { %v1845_v57 = vld [vmem:[#allocation2 + $0x80] sm:$0xff]  ;;  %1814 = vst.msk [vmem:[#allocation2 + $0x88] sm:$0xff] %vm1796_vm9, %v1735_v18  ;;  %1798 = vst.msk [vmem:[#allocation2 + $0x8] sm:$0xff] %vm1796_vm9, %v1703_v56  ;;  %v2612_v18 = vld [vmem:[%s3017_s7 + $0xb2] sm:$0xff] }
 0x18c   : > { %2745 = vmatprep.mubr.msk.f32.mxu1 %vm1866_vm10, %v1845_v57  ;;  %1362 = vrot.lane.b32.xlu1 %v3249_v53, %s2927_s13 }
 0x18d   : > { %1330 = vrot.lane.b32.xlu0 %v2545_v51, %s2927_s13  ;;  %v2628_v51 = vld [vmem:[%s3017_s7 + $0x172] sm:$0xff] }
 0x18e   : > { %v1157_v31 = vpop.permute.xlu1 %1156  ;;  %v1125_v0 = vpop.permute.xlu0 %1124 }
 0x18f   : > { %1234 = vst.msk [vmem:[#allocation2 + $0x98] sm:$0xff] %vm1214_vm6, %v1157_v31  ;;  %1218 = vst.msk [vmem:[#allocation2 + $0x18] sm:$0xff] %vm1214_vm6, %v1125_v0 }
 0x190   : > { %1364 = vrot.lane.b32.xlu1 %v3246_v52, %s2927_s13 }
 0x191   : > { %1332 = vrot.lane.b32.xlu0 %v2546_v28, %s2927_s13 }
 0x192   : > { %v1351_v32 = vpop.permute.xlu1 %1350  ;;  %v1319_v33 = vpop.permute.xlu0 %1318  ;;  %v1830_v53 = vld [vmem:[#allocation2 + $0x8] sm:$0xff] }
 0x193   : > { %v1846_v34 = vld [vmem:[#allocation2 + $0x88] sm:$0xff]  ;;  %1429 = vst.msk [vmem:[#allocation2 + $0x90] sm:$0xff] %vm1410_vm7, %v1351_v32  ;;  %1413 = vst.msk [vmem:[#allocation2 + $0x10] sm:$0xff] %vm1410_vm7, %v1319_v33  ;;  %2722 = vmatmul.mubr.msk.f32.vlgmr.msra.gmra.mxu0 %vm1866_vm10, %v1830_v53 }
 0x194   : > { %2746 = vmatmul.mubr.msk.f32.vlgmr.msra.gmra.mxu1 %vm1866_vm10, %v1846_v34  ;;  %1555 = vrot.lane.b32.xlu1 %v2593_v2, %s2928_s14 }
 0x195   : > { %1523 = vrot.lane.b32.xlu0 %v2577_v21, %s2928_s14 }
 0x196   : > { %v1353_v52 = vpop.permute.xlu1 %1352  ;;  %v1321_v35 = vpop.permute.xlu0 %1320 }
 0x197   : > { %1430 = vst.msk [vmem:[#allocation2 + $0x98] sm:$0xff] %vm1410_vm7, %v1353_v52  ;;  %1414 = vst.msk [vmem:[#allocation2 + $0x18] sm:$0xff] %vm1410_vm7, %v1321_v35  ;;  %v2566_v52 = vld [vmem:[%s3017_s7 + $0x188] sm:$0xff] }
 0x198   : > { %977 = vrot.lane.b32.xlu1 %v2593_v2, %s2925_s11  ;;  %v2565_v2 = vld [vmem:[%s3017_s7 + $0x180] sm:$0xff]  ;;  %v2550_v35 = vld [vmem:[%s3017_s7 + $0xc8] sm:$0xff] }
 0x199   : > { %945 = vrot.lane.b32.xlu0 %v2577_v21, %s2925_s11  ;;  %v2549_v21 = vld [vmem:[%s3017_s7 + $0xc0] sm:$0xff] }
 0x19a   : > { %v1544_v9 = vpop.permute.xlu1 %1543  ;;  %v1512_v25 = vpop.permute.xlu0 %1511 }
 0x19b   : > { %1622 = vst.msk [vmem:[#allocation2 + $0x90] sm:$0xff] %vm1603_vm8, %v1544_v9  ;;  %1606 = vst.msk [vmem:[#allocation2 + $0x10] sm:$0xff] %vm1603_vm8, %v1512_v25  ;;  %v2597_v9 = vld [vmem:[%s3017_s7 + $0x181] sm:$0xff] }
 0x19c   : > { %1557 = vrot.lane.b32.xlu1 %v2594_v8, %s2928_s14  ;;  %v2581_v25 = vld [vmem:[%s3017_s7 + $0xc1] sm:$0xff] }
 0x19d   : > { %1525 = vrot.lane.b32.xlu0 %v2578_v45, %s2928_s14 }
 0x19e   : > { %v1514_v24 = vpop.permute.xlu1 %1513  ;;  %v966_v11 = vpop.permute.xlu0 %965 }
 0x19f   : > { %1607 = vst.msk [vmem:[#allocation2 + $0x18] sm:$0xff] %vm1603_vm8, %v1514_v24 }
 0x1a0   : > { %1042 = vst.msk [vmem:[#allocation2 + $0xa0] sm:$0xff] %vm1021_vm5, %v966_v11  ;;  %1748 = vrot.lane.b32.xlu1 %v2625_v10, %s2929_s29 }
 0x1a1   : > { %1716 = vrot.lane.b32.xlu0 %v2609_v44, %s2929_s29 }
 0x1a2   : > { %v1705_v42 = vpop.permute.xlu1 %1704  ;;  %v1546_v43 = vpop.permute.xlu0 %1545 }
 0x1a3   : > { %1799 = vst.msk [vmem:[#allocation2 + $0x10] sm:$0xff] %vm1796_vm9, %v1705_v42  ;;  %v2598_v42 = vld [vmem:[%s3017_s7 + $0x189] sm:$0xff] }
 0x1a4   : > { %1623 = vst.msk [vmem:[#allocation2 + $0x98] sm:$0xff] %vm1603_vm8, %v1546_v43  ;;  %979 = vrot.lane.b32.xlu1 %v2594_v8, %s2925_s11  ;;  %v2582_v43 = vld [vmem:[%s3017_s7 + $0xc9] sm:$0xff] }
 0x1a5   : > { %947 = vrot.lane.b32.xlu0 %v2578_v45, %s2925_s11 }
 0x1a6   : > { %v968_v14 = vpop.permute.xlu1 %967  ;;  %v1737_v3 = vpop.permute.xlu0 %1736 }
 0x1a7   : > { %1043 = vst.msk [vmem:[#allocation2 + $0xa8] sm:$0xff] %vm1021_vm5, %v968_v14 }
 0x1a8   : > { %1815 = vst.msk [vmem:[#allocation2 + $0x90] sm:$0xff] %vm1796_vm9, %v1737_v3  ;;  %1170 = vrot.lane.b32.xlu1 %v2625_v10, %s2926_s12 }
 0x1a9   : > { %1138 = vrot.lane.b32.xlu0 %v2609_v44, %s2926_s12 }
 0x1aa   : > { %v1159_v20 = vpop.permute.xlu1 %1158  ;;  %v1127_v39 = vpop.permute.xlu0 %1126  ;;  %v1831_v19 = vld [vmem:[#allocation2 + $0x10] sm:$0xff] }
 0x1ab   : > { %1235 = vst.msk [vmem:[#allocation2 + $0xa0] sm:$0xff] %vm1214_vm6, %v1159_v20  ;;  %1219 = vst.msk [vmem:[#allocation2 + $0x20] sm:$0xff] %vm1214_vm6, %v1127_v39  ;;  %2724 = vmatprep.mubr.msk.f32.mxu0 %vm1866_vm10, %v1831_v19 }
 0x1ac   : > { %1750 = vrot.lane.b32.xlu1 %v2626_v13, %s2929_s29 }
 0x1ad   : > { %1718 = vrot.lane.b32.xlu0 %v2610_v1, %s2929_s29 }
 0x1ae   : > { %v1739_v5 = vpop.permute.xlu1 %1738  ;;  %v1707_v38 = vpop.permute.xlu0 %1706 }
 0x1af   : > { %v1847_v36 = vld [vmem:[#allocation2 + $0x90] sm:$0xff]  ;;  %1816 = vst.msk [vmem:[#allocation2 + $0x98] sm:$0xff] %vm1796_vm9, %v1739_v5  ;;  %1800 = vst.msk [vmem:[#allocation2 + $0x18] sm:$0xff] %vm1796_vm9, %v1707_v38 }
 0x1b0   : > { %2748 = vmatprep.mubr.msk.f32.mxu1 %vm1866_vm10, %v1847_v36  ;;  %1172 = vrot.lane.b32.xlu1 %v2626_v13, %s2926_s12  ;;  %v2629_v13 = vld [vmem:[%s3017_s7 + $0x182] sm:$0xff] }
 0x1b1   : > { %1140 = vrot.lane.b32.xlu0 %v2610_v1, %s2926_s12  ;;  %v2613_v1 = vld [vmem:[%s3017_s7 + $0xc2] sm:$0xff] }
 0x1b2   : > { %v1161_v37 = vpop.permute.xlu1 %1160  ;;  %v1129_v58 = vpop.permute.xlu0 %1128 }
 0x1b3   : > { %1236 = vst.msk [vmem:[#allocation2 + $0xa8] sm:$0xff] %vm1214_vm6, %v1161_v37  ;;  %1220 = vst.msk [vmem:[#allocation2 + $0x28] sm:$0xff] %vm1214_vm6, %v1129_v58  ;;  %v2630_v37 = vld [vmem:[%s3017_s7 + $0x18a] sm:$0xff] }
 0x1b4   : > { %1366 = vrot.lane.b32.xlu1 %v2563_v4, %s2927_s13  ;;  %v2614_v58 = vld [vmem:[%s3017_s7 + $0xca] sm:$0xff] }
 0x1b5   : > { %1334 = vrot.lane.b32.xlu0 %v2547_v47, %s2927_s13 }
 0x1b6   : > { %v1355_v16 = vpop.permute.xlu1 %1354  ;;  %v1323_v49 = vpop.permute.xlu0 %1322  ;;  %v1832_v46 = vld [vmem:[#allocation2 + $0x18] sm:$0xff] }
 0x1b7   : > { %v1848_v27 = vld [vmem:[#allocation2 + $0x98] sm:$0xff]  ;;  %1431 = vst.msk [vmem:[#allocation2 + $0xa0] sm:$0xff] %vm1410_vm7, %v1355_v16  ;;  %1415 = vst.msk [vmem:[#allocation2 + $0x20] sm:$0xff] %vm1410_vm7, %v1323_v49  ;;  %2725 = vmatmul.mubr.msk.f32.gmra.mxu0 %vm1866_vm10, %v1832_v46 }
 0x1b8   : > { %2749 = vmatmul.mubr.msk.f32.gmra.mxu1 %vm1866_vm10, %v1848_v27  ;;  %1368 = vrot.lane.b32.xlu1 %v2564_v59, %s2927_s13 }
 0x1b9   : > { %1336 = vrot.lane.b32.xlu0 %v2548_v12, %s2927_s13 }
 0x1ba   : > { %v1357_v62 = vpop.permute.xlu1 %1356  ;;  %v1325_v26 = vpop.permute.xlu0 %1324 }
 0x1bb   : > { %1432 = vst.msk [vmem:[#allocation2 + $0xa8] sm:$0xff] %vm1410_vm7, %v1357_v62  ;;  %1416 = vst.msk [vmem:[#allocation2 + $0x28] sm:$0xff] %vm1410_vm7, %v1325_v26 }
 0x1bc   : > { %1559 = vrot.lane.b32.xlu1 %v2595_v60, %s2928_s14 }
 0x1bd   : > { %1527 = vrot.lane.b32.xlu0 %v2579_v48, %s2928_s14 }
 0x1be   : > { %v1548_v63 = vpop.permute.xlu1 %1547  ;;  %v1516_v17 = vpop.permute.xlu0 %1515 }
 0x1bf   : > { %1624 = vst.msk [vmem:[#allocation2 + $0xa0] sm:$0xff] %vm1603_vm8, %v1548_v63  ;;  %1608 = vst.msk [vmem:[#allocation2 + $0x20] sm:$0xff] %vm1603_vm8, %v1516_v17  ;;  %v2568_v63 = vld [vmem:[%s3017_s7 + $0x1a0] sm:$0xff] }
 0x1c0   : > { %981 = vrot.lane.b32.xlu1 %v2595_v60, %s2925_s11  ;;  %v2567_v60 = vld [vmem:[%s3017_s7 + $0x198] sm:$0xff]  ;;  %v2552_v17 = vld [vmem:[%s3017_s7 + $0xe0] sm:$0xff] }
 0x1c1   : > { %949 = vrot.lane.b32.xlu0 %v2579_v48, %s2925_s11  ;;  %v2551_v48 = vld [vmem:[%s3017_s7 + $0xd8] sm:$0xff] }
 0x1c2   : > { %v1518_v61 = vpop.permute.xlu1 %1517  ;;  %v970_v15 = vpop.permute.xlu0 %969 }
 0x1c3   : > { %1609 = vst.msk [vmem:[#allocation2 + $0x28] sm:$0xff] %vm1603_vm8, %v1518_v61  ;;  %v2599_v61 = vld [vmem:[%s3017_s7 + $0x199] sm:$0xff] }
 0x1c4   : > { %1044 = vst.msk [vmem:[#allocation2 + $0xb0] sm:$0xff] %vm1021_vm5, %v970_v15  ;;  %1561 = vrot.lane.b32.xlu1 %v2596_v54, %s2928_s14  ;;  %v2583_v15 = vld [vmem:[%s3017_s7 + $0xd9] sm:$0xff] }
 0x1c5   : > { %1529 = vrot.lane.b32.xlu0 %v2580_v30, %s2928_s14 }
 0x1c6   : > { %v1709_v41 = vpop.permute.xlu1 %1708  ;;  %v1550_v22 = vpop.permute.xlu0 %1549 }
 0x1c7   : > { %1801 = vst.msk [vmem:[#allocation2 + $0x20] sm:$0xff] %vm1796_vm9, %v1709_v41  ;;  %v2600_v41 = vld [vmem:[%s3017_s7 + $0x1a1] sm:$0xff] }
 0x1c8   : > { %1625 = vst.msk [vmem:[#allocation2 + $0xa8] sm:$0xff] %vm1603_vm8, %v1550_v22  ;;  %1752 = vrot.lane.b32.xlu1 %v2627_v29, %s2929_s29  ;;  %v2584_v22 = vld [vmem:[%s3017_s7 + $0xe1] sm:$0xff] }
 0x1c9   : > { %1720 = vrot.lane.b32.xlu0 %v2611_v23, %s2929_s29 }
 0x1ca   : > { %v972_v40 = vpop.permute.xlu1 %971  ;;  %v1741_v7 = vpop.permute.xlu0 %1740 }
 0x1cb   : > { %1045 = vst.msk [vmem:[#allocation2 + $0xb8] sm:$0xff] %vm1021_vm5, %v972_v40 }
 0x1cc   : > { %1817 = vst.msk [vmem:[#allocation2 + $0xa0] sm:$0xff] %vm1796_vm9, %v1741_v7  ;;  %983 = vrot.lane.b32.xlu1 %v2596_v54, %s2925_s11 }
 0x1cd   : > { %951 = vrot.lane.b32.xlu0 %v2580_v30, %s2925_s11 }
 0x1ce   : > { %v1163_v55 = vpop.permute.xlu1 %1162  ;;  %v1131_v50 = vpop.permute.xlu0 %1130  ;;  %v1833_v6 = vld [vmem:[#allocation2 + $0x20] sm:$0xff] }
 0x1cf   : > { %1237 = vst.msk [vmem:[#allocation2 + $0xb0] sm:$0xff] %vm1214_vm6, %v1163_v55  ;;  %1221 = vst.msk [vmem:[#allocation2 + $0x30] sm:$0xff] %vm1214_vm6, %v1131_v50  ;;  %2727 = vmatprep.mubr.msk.f32.mxu0 %vm1866_vm10, %v1833_v6  ;;  %v2631_v55 = vld [vmem:[%s3017_s7 + $0x19a] sm:$0xff] }
 0x1d0   : > { %1174 = vrot.lane.b32.xlu1 %v2627_v29, %s2926_s12  ;;  %v2615_v50 = vld [vmem:[%s3017_s7 + $0xda] sm:$0xff] }
 0x1d1   : > { %1142 = vrot.lane.b32.xlu0 %v2611_v23, %s2926_s12 }
 0x1d2   : > { %v1743_v56 = vpop.permute.xlu1 %1742  ;;  %v1711_v57 = vpop.permute.xlu0 %1710 }
 0x1d3   : > { %v1849_v28 = vld [vmem:[#allocation2 + $0xa0] sm:$0xff]  ;;  %1818 = vst.msk [vmem:[#allocation2 + $0xa8] sm:$0xff] %vm1796_vm9, %v1743_v56  ;;  %1802 = vst.msk [vmem:[#allocation2 + $0x28] sm:$0xff] %vm1796_vm9, %v1711_v57 }
 0x1d4   : > { %2751 = vmatprep.mubr.msk.f32.mxu1 %vm1866_vm10, %v1849_v28  ;;  %1754 = vrot.lane.b32.xlu1 %v2628_v51, %s2929_s29  ;;  %v2616_v56 = vld [vmem:[%s3017_s7 + $0xe2] sm:$0xff] }
 0x1d5   : > { %1722 = vrot.lane.b32.xlu0 %v2612_v18, %s2929_s29 }
 0x1d6   : > { %v1165_v31 = vpop.permute.xlu1 %1164  ;;  %v1133_v0 = vpop.permute.xlu0 %1132 }
 0x1d7   : > { %1238 = vst.msk [vmem:[#allocation2 + $0xb8] sm:$0xff] %vm1214_vm6, %v1165_v31  ;;  %1222 = vst.msk [vmem:[#allocation2 + $0x38] sm:$0xff] %vm1214_vm6, %v1133_v0 }
 0x1d8   : > { %1176 = vrot.lane.b32.xlu1 %v2628_v51, %s2926_s12 }
 0x1d9   : > { %1144 = vrot.lane.b32.xlu0 %v2612_v18, %s2926_s12  ;;  %v2632_v18 = vld [vmem:[%s3017_s7 + $0x1a2] sm:$0xff]  ;;  %s202_s7 = sand.u32 1, %s2904_s16  }
 0x1da   : > { %v1359_v32 = vpop.permute.xlu1 %1358  ;;  %v1327_v33 = vpop.permute.xlu0 %1326  ;;  %v1834_v53 = vld [vmem:[#allocation2 + $0x28] sm:$0xff]  ;;  %s2439_s22 = sshll.u32 %s202_s7, 8  ;;  %s4170_s18 = scalar_lea.sflag [#allocation4], %s202_s7 }
 0x1db   : > { %v1850_v34 = vld [vmem:[#allocation2 + $0xa8] sm:$0xff]  ;;  %1433 = vst.msk [vmem:[#allocation2 + $0xb0] sm:$0xff] %vm1410_vm7, %v1359_v32  ;;  %1417 = vst.msk [vmem:[#allocation2 + $0x30] sm:$0xff] %vm1410_vm7, %v1327_v33  ;;  %2728 = vmatmul.mubr.msk.f32.gmra.mxu0 %vm1866_vm10, %v1834_v53  ;;  %s4035_s24 = scalar_lea.vmem [#allocation3], %s2439_s22 }
 0x1dc   : > { %2752 = vmatmul.mubr.msk.f32.gmra.mxu1 %vm1866_vm10, %v1850_v34  ;;  %1370 = vrot.lane.b32.xlu1 %v2565_v2, %s2927_s13 }
 0x1dd   : > { %1338 = vrot.lane.b32.xlu0 %v2549_v21, %s2927_s13 }
 0x1de   : > { %v1361_v8 = vpop.permute.xlu1 %1360  ;;  %v1329_v45 = vpop.permute.xlu0 %1328 }
 0x1df   : > { %1434 = vst.msk [vmem:[#allocation2 + $0xb8] sm:$0xff] %vm1410_vm7, %v1361_v8  ;;  %1418 = vst.msk [vmem:[#allocation2 + $0x38] sm:$0xff] %vm1410_vm7, %v1329_v45 }
 0x1e0   : > { %1372 = vrot.lane.b32.xlu1 %v2566_v52, %s2927_s13 }
 0x1e1   : > { %1340 = vrot.lane.b32.xlu0 %v2550_v35, %s2927_s13 }
 0x1e2   : > { %v1552_v10 = vpop.permute.xlu1 %1551  ;;  %v1520_v44 = vpop.permute.xlu0 %1519 }
 0x1e3   : > { %1626 = vst.msk [vmem:[#allocation2 + $0xb0] sm:$0xff] %vm1603_vm8, %v1552_v10  ;;  %1610 = vst.msk [vmem:[#allocation2 + $0x30] sm:$0xff] %vm1603_vm8, %v1520_v44 }
 0x1e4   : > { %1563 = vrot.lane.b32.xlu1 %v2597_v9, %s2928_s14 }
 0x1e5   : > { %1531 = vrot.lane.b32.xlu0 %v2581_v25, %s2928_s14 }
 0x1e6   : > { %v1522_v24 = vpop.permute.xlu1 %1521  ;;  %v974_v11 = vpop.permute.xlu0 %973 }
 0x1e7   : > { %1611 = vst.msk [vmem:[#allocation2 + $0x38] sm:$0xff] %vm1603_vm8, %v1522_v24 }
 0x1e8   : > { %1046 = vst.msk [vmem:[#allocation2 + $0xc0] sm:$0xff] %vm1021_vm5, %v974_v11  ;;  %985 = vrot.lane.b32.xlu1 %v2597_v9, %s2925_s11 }
 0x1e9   : > { %953 = vrot.lane.b32.xlu0 %v2581_v25, %s2925_s11 }
 0x1ea   : > { %v1713_v14 = vpop.permute.xlu1 %1712  ;;  %v1554_v3 = vpop.permute.xlu0 %1553 }
 0x1eb   : > { %1803 = vst.msk [vmem:[#allocation2 + $0x30] sm:$0xff] %vm1796_vm9, %v1713_v14 }
 0x1ec   : > { %1627 = vst.msk [vmem:[#allocation2 + $0xb8] sm:$0xff] %vm1603_vm8, %v1554_v3  ;;  %1565 = vrot.lane.b32.xlu1 %v2598_v42, %s2928_s14 }
 0x1ed   : > { %1533 = vrot.lane.b32.xlu0 %v2582_v43, %s2928_s14 }
 0x1ee   : > { %v976_v20 = vpop.permute.xlu1 %975  ;;  %v1745_v39 = vpop.permute.xlu0 %1744 }
 0x1ef   : > { %1047 = vst.msk [vmem:[#allocation2 + $0xc8] sm:$0xff] %vm1021_vm5, %v976_v20 }
 0x1f0   : > { %1819 = vst.msk [vmem:[#allocation2 + $0xb0] sm:$0xff] %vm1796_vm9, %v1745_v39  ;;  %1756 = vrot.lane.b32.xlu1 %v2629_v13, %s2929_s29 }
 0x1f1   : > { %1724 = vrot.lane.b32.xlu0 %v2613_v1, %s2929_s29 }
 0x1f2   : > { %v1167_v19 = vpop.permute.xlu1 %1166  ;;  %v1135_v5 = vpop.permute.xlu0 %1134  ;;  %v1835_v38 = vld [vmem:[#allocation2 + $0x30] sm:$0xff] }
 0x1f3   : > { %1239 = vst.msk [vmem:[#allocation2 + $0xc0] sm:$0xff] %vm1214_vm6, %v1167_v19  ;;  %1223 = vst.msk [vmem:[#allocation2 + $0x40] sm:$0xff] %vm1214_vm6, %v1135_v5  ;;  %2730 = vmatprep.mubr.msk.f32.mxu0 %vm1866_vm10, %v1835_v38 }
 0x1f4   : > { %987 = vrot.lane.b32.xlu1 %v2598_v42, %s2925_s11 }
 0x1f5   : > { %955 = vrot.lane.b32.xlu0 %v2582_v43, %s2925_s11  ;;  %s2850_s11 = scalar_lea.vmem %s2849_s21, 8192 }
 0x1f6   : > { %v1747_v36 = vpop.permute.xlu1 %1746  ;;  %v1715_v4 = vpop.permute.xlu0 %1714 }
 0x1f7   : > { %v1851_v47 = vld [vmem:[#allocation2 + $0xb0] sm:$0xff]  ;;  %1820 = vst.msk [vmem:[#allocation2 + $0xb8] sm:$0xff] %vm1796_vm9, %v1747_v36  ;;  %1804 = vst.msk [vmem:[#allocation2 + $0x38] sm:$0xff] %vm1796_vm9, %v1715_v4 }
 0x1f8   : > { %2754 = vmatprep.mubr.msk.f32.mxu1 %vm1866_vm10, %v1851_v47  ;;  %1178 = vrot.lane.b32.xlu1 %v2629_v13, %s2926_s12 }
 0x1f9   : > { %1146 = vrot.lane.b32.xlu0 %v2613_v1, %s2926_s12 }
 0x1fa   : > { %v1169_v59 = vpop.permute.xlu1 %1168  ;;  %v1137_v12 = vpop.permute.xlu0 %1136 }
 0x1fb   : > { %1240 = vst.msk [vmem:[#allocation2 + $0xc8] sm:$0xff] %vm1214_vm6, %v1169_v59  ;;  %1224 = vst.msk [vmem:[#allocation2 + $0x48] sm:$0xff] %vm1214_vm6, %v1137_v12 }
 0x1fc   : > { %1758 = vrot.lane.b32.xlu1 %v2630_v37, %s2929_s29 }
 0x1fd   : > { %1726 = vrot.lane.b32.xlu0 %v2614_v58, %s2929_s29 }
 0x1fe   : > { %v1363_v16 = vpop.permute.xlu1 %1362  ;;  %v1836_v46 = vld [vmem:[#allocation2 + $0x38] sm:$0xff] }
 0x1ff   : > { %v1331_v49 = vpop.permute.xlu0 %1330  ;;  %v1852_v27 = vld [vmem:[#allocation2 + $0xb8] sm:$0xff]  ;;  %1435 = vst.msk [vmem:[#allocation2 + $0xc0] sm:$0xff] %vm1410_vm7, %v1363_v16  ;;  %2731 = vmatmul.mubr.msk.f32.gmra.mxu0 %vm1866_vm10, %v1836_v46  ;;  %v4014_v16 = vld [vmem:[%s4218_s2] ss:$0 sm:$0xff] }
 0x200   : > { %1419 = vst.msk [vmem:[#allocation2 + $0x40] sm:$0xff] %vm1410_vm7, %v1331_v49  ;;  %2755 = vmatmul.mubr.msk.f32.gmra.mxu1 %vm1866_vm10, %v1852_v27  ;;  %1180 = vrot.lane.b32.xlu1 %v2630_v37, %s2926_s12 }
 0x201   : > { %1148 = vrot.lane.b32.xlu0 %v2614_v58, %s2926_s12 }
 0x202   : > { %v1365_v62 = vpop.permute.xlu1 %1364 }
 0x203   : > { %v1333_v26 = vpop.permute.xlu0 %1332  ;;  %1436 = vst.msk [vmem:[#allocation2 + $0xc8] sm:$0xff] %vm1410_vm7, %v1365_v62 }
 0x204   : > { %1420 = vst.msk [vmem:[#allocation2 + $0x48] sm:$0xff] %vm1410_vm7, %v1333_v26  ;;  %1374 = vrot.lane.b32.xlu1 %v2567_v60, %s2927_s13  ;;  %v4021_v60 = vld [vmem:[%s4219_s3] ss:$0 sm:$0xff] }
 0x205   : > { %1342 = vrot.lane.b32.xlu0 %v2551_v48, %s2927_s13 }
 0x206   : > { %v1556_v54 = vpop.permute.xlu1 %1555 }
 0x207   : > { %v1524_v30 = vpop.permute.xlu0 %1523  ;;  %1628 = vst.msk [vmem:[#allocation2 + $0xc0] sm:$0xff] %vm1603_vm8, %v1556_v54 }
 0x208   : > { %1612 = vst.msk [vmem:[#allocation2 + $0x40] sm:$0xff] %vm1603_vm8, %v1524_v30  ;;  %1376 = vrot.lane.b32.xlu1 %v2568_v63, %s2927_s13 }
 0x209   : > { %1344 = vrot.lane.b32.xlu0 %v2552_v17, %s2927_s13 }
 0x20a   : > { %v978_v29 = vpop.permute.xlu1 %977 }
 0x20b   : > { %v946_v23 = vpop.permute.xlu0 %945  ;;  %1048 = vst.msk [vmem:[#allocation2 + $0xd0] sm:$0xff] %vm1021_vm5, %v978_v29 }
 0x20c   : > { %1032 = vst.msk [vmem:[#allocation2 + $0x50] sm:$0xff] %vm1021_vm5, %v946_v23  ;;  %1567 = vrot.lane.b32.xlu1 %v2599_v61, %s2928_s14 }
 0x20d   : > { %1535 = vrot.lane.b32.xlu0 %v2583_v15, %s2928_s14 }
 0x20e   : > { %v1558_v40 = vpop.permute.xlu1 %1557 }
 0x20f   : > { %v1526_v7 = vpop.permute.xlu0 %1525  ;;  %1629 = vst.msk [vmem:[#allocation2 + $0xc8] sm:$0xff] %vm1603_vm8, %v1558_v40 }
 0x210   : > { %1613 = vst.msk [vmem:[#allocation2 + $0x48] sm:$0xff] %vm1603_vm8, %v1526_v7  ;;  %1569 = vrot.lane.b32.xlu1 %v2600_v41, %s2928_s14 }
 0x211   : > { %1537 = vrot.lane.b32.xlu0 %v2584_v22, %s2928_s14 }
 0x212   : > { %v1749_v6 = vpop.permute.xlu1 %1748 }
 0x213   : > { %v1717_v51 = vpop.permute.xlu0 %1716  ;;  %1821 = vst.msk [vmem:[#allocation2 + $0xc0] sm:$0xff] %vm1796_vm9, %v1749_v6 }
 0x214   : > { %1805 = vst.msk [vmem:[#allocation2 + $0x40] sm:$0xff] %vm1796_vm9, %v1717_v51  ;;  %1760 = vrot.lane.b32.xlu1 %v2631_v55, %s2929_s29 }
 0x215   : > { %1728 = vrot.lane.b32.xlu0 %v2615_v50, %s2929_s29 }
 0x216   : > { %v980_v57 = vpop.permute.xlu1 %979 }
 0x217   : > { %v948_v28 = vpop.permute.xlu0 %947  ;;  %1049 = vst.msk [vmem:[#allocation2 + $0xd8] sm:$0xff] %vm1021_vm5, %v980_v57 }
 0x218   : > { %1033 = vst.msk [vmem:[#allocation2 + $0x58] sm:$0xff] %vm1021_vm5, %v948_v28  ;;  %1762 = vrot.lane.b32.xlu1 %v2632_v18, %s2929_s29 }
 0x219   : > { %1730 = vrot.lane.b32.xlu0 %v2616_v56, %s2929_s29  ;;  %s2351_s29 = sshll.u32 %s4035_s24, 4  ;;  %s4164_s29 = int_to_ptr.vmem [resolvable:$true] %s2351_s29 }
 0x21a   : > { %v1171_v31 = vpop.permute.xlu1 %1170  ;;  %v1853_v21 = vld [vmem:[#allocation2 + $0xc0] sm:$0xff]  ;;  %s2844_s8 = scalar_lea.vmem %s4164_s29, 4096  ;;  %p2851_p1 = scmp.lt.s32.totalorder %s4164_s29, %s2849_s21 }
 0x21b   : > { %v1139_v0 = vpop.permute.xlu0 %1138  ;;  %v1837_v2 = vld [vmem:[#allocation2 + $0x40] sm:$0xff]  ;;  %1241 = vst.msk [vmem:[#allocation2 + $0xd0] sm:$0xff] %vm1214_vm6, %v1171_v31  ;;  %2757 = vmatprep.mubr.msk.f32.mxu1 %vm1866_vm10, %v1853_v21  ;;  %p2845_p12 = scmp.ne.s32.totalorder %s4164_s29, %s2844_s8  ;;  %p2852_p2 = scmp.lt.s32.totalorder %s2850_s11, %s2844_s8 }
 0x21c   : > { %1225 = vst.msk [vmem:[#allocation2 + $0x50] sm:$0xff] %vm1214_vm6, %v1139_v0  ;;  %2733 = vmatprep.mubr.msk.f32.mxu0 %vm1866_vm10, %v1837_v2 }
 0x21d   : > { %p2846_p13 = pnand %p2845_p12, %p2997_p4  ;;  %p2853_p3 = por %p2852_p2, %p2851_p1 }
 0x21e   : > { %v1751_v32 = vpop.permute.xlu1 %1750 }
 0x21f   : > { %v1719_v33 = vpop.permute.xlu0 %1718  ;;  %1822 = vst.msk [vmem:[#allocation2 + $0xc8] sm:$0xff] %vm1796_vm9, %v1751_v32  ;;  %p2847_p0 = pneg %p2846_p13 }
 0x220   : > { %1806 = vst.msk [vmem:[#allocation2 + $0x48] sm:$0xff] %vm1796_vm9, %v1719_v33 }
 0x221   : > { %p2854_p5 = pnand %p2853_p3, %p2847_p0 }
 0x222   : > { %v1173_v53 = vpop.permute.xlu1 %1172 }
 0x223   : > { %v1141_v34 = vpop.permute.xlu0 %1140  ;;  %1242 = vst.msk [vmem:[#allocation2 + $0xd8] sm:$0xff] %vm1214_vm6, %v1173_v53 }
 0x224   : > { %1226 = vst.msk [vmem:[#allocation2 + $0x58] sm:$0xff] %vm1214_vm6, %v1141_v34 }
 0x226   : > { %v1367_v52 = vpop.permute.xlu1 %1366  ;;  %v1854_v45 = vld [vmem:[#allocation2 + $0xc8] sm:$0xff] }
 0x227   : > { %v1335_v35 = vpop.permute.xlu0 %1334  ;;  %v1838_v8 = vld [vmem:[#allocation2 + $0x48] sm:$0xff]  ;;  %1437 = vst.msk [vmem:[#allocation2 + $0xd0] sm:$0xff] %vm1410_vm7, %v1367_v52  ;;  %2758 = vmatmul.mubr.msk.f32.gmra.mxu1 %vm1866_vm10, %v1854_v45 }
 0x228   : > { %1421 = vst.msk [vmem:[#allocation2 + $0x50] sm:$0xff] %vm1410_vm7, %v1335_v35  ;;  %2734 = vmatmul.mubr.msk.f32.gmra.mxu0 %vm1866_vm10, %v1838_v8 }
 0x22a   : > { %v1369_v9 = vpop.permute.xlu1 %1368 }
 0x22b   : > { %v1337_v25 = vpop.permute.xlu0 %1336  ;;  %1438 = vst.msk [vmem:[#allocation2 + $0xd8] sm:$0xff] %vm1410_vm7, %v1369_v9 }
 0x22c   : > { %1422 = vst.msk [vmem:[#allocation2 + $0x58] sm:$0xff] %vm1410_vm7, %v1337_v25 }
 0x22e   : > { %v1560_v10 = vpop.permute.xlu1 %1559 }
 0x22f   : > { %v1528_v44 = vpop.permute.xlu0 %1527  ;;  %1630 = vst.msk [vmem:[#allocation2 + $0xd0] sm:$0xff] %vm1603_vm8, %v1560_v10 }
 0x230   : > { %1614 = vst.msk [vmem:[#allocation2 + $0x50] sm:$0xff] %vm1603_vm8, %v1528_v44 }
 0x232   : > { %v982_v24 = vpop.permute.xlu1 %981 }
 0x233   : > { %v950_v11 = vpop.permute.xlu0 %949  ;;  %1050 = vst.msk [vmem:[#allocation2 + $0xe0] sm:$0xff] %vm1021_vm5, %v982_v24 }
 0x234   : > { %1034 = vst.msk [vmem:[#allocation2 + $0x60] sm:$0xff] %vm1021_vm5, %v950_v11 }
 0x236   : > { %v1562_v42 = vpop.permute.xlu1 %1561 }
 0x237   : > { %v1530_v43 = vpop.permute.xlu0 %1529  ;;  %1631 = vst.msk [vmem:[#allocation2 + $0xd8] sm:$0xff] %vm1603_vm8, %v1562_v42 }
 0x238   : > { %1615 = vst.msk [vmem:[#allocation2 + $0x58] sm:$0xff] %vm1603_vm8, %v1530_v43 }
 0x23a   : > { %v1753_v14 = vpop.permute.xlu1 %1752 }
 0x23b   : > { %v1721_v3 = vpop.permute.xlu0 %1720  ;;  %1823 = vst.msk [vmem:[#allocation2 + $0xd0] sm:$0xff] %vm1796_vm9, %v1753_v14 }
 0x23c   : > { %1807 = vst.msk [vmem:[#allocation2 + $0x50] sm:$0xff] %vm1796_vm9, %v1721_v3 }
 0x23e   : > { %v984_v13 = vpop.permute.xlu1 %983 }
 0x23f   : > { %v952_v1 = vpop.permute.xlu0 %951  ;;  %1051 = vst.msk [vmem:[#allocation2 + $0xe8] sm:$0xff] %vm1021_vm5, %v984_v13 }
 0x240   : > { %1035 = vst.msk [vmem:[#allocation2 + $0x68] sm:$0xff] %vm1021_vm5, %v952_v1 }
 0x242   : > { %v1175_v20 = vpop.permute.xlu1 %1174  ;;  %v1855_v5 = vld [vmem:[#allocation2 + $0xd0] sm:$0xff] }
 0x243   : > { %v1143_v39 = vpop.permute.xlu0 %1142  ;;  %v1839_v19 = vld [vmem:[#allocation2 + $0x50] sm:$0xff]  ;;  %1243 = vst.msk [vmem:[#allocation2 + $0xe0] sm:$0xff] %vm1214_vm6, %v1175_v20  ;;  %2760 = vmatprep.mubr.msk.f32.mxu1 %vm1866_vm10, %v1855_v5 }
 0x244   : > { %1227 = vst.msk [vmem:[#allocation2 + $0x60] sm:$0xff] %vm1214_vm6, %v1143_v39  ;;  %2736 = vmatprep.mubr.msk.f32.mxu0 %vm1866_vm10, %v1839_v19 }
 0x246   : > { %v1755_v38 = vpop.permute.xlu1 %1754 }
 0x247   : > { %v1723_v36 = vpop.permute.xlu0 %1722  ;;  %1824 = vst.msk [vmem:[#allocation2 + $0xd8] sm:$0xff] %vm1796_vm9, %v1755_v38 }
 0x248   : > { %1808 = vst.msk [vmem:[#allocation2 + $0x58] sm:$0xff] %vm1796_vm9, %v1723_v36 }
 0x24a   : > { %v1177_v4 = vpop.permute.xlu1 %1176 }
 0x24b   : > { %v1145_v47 = vpop.permute.xlu0 %1144  ;;  %1244 = vst.msk [vmem:[#allocation2 + $0xe8] sm:$0xff] %vm1214_vm6, %v1177_v4 }
 0x24c   : > { %1228 = vst.msk [vmem:[#allocation2 + $0x68] sm:$0xff] %vm1214_vm6, %v1145_v47 }
 0x24e   : > { %v1371_v37 = vpop.permute.xlu1 %1370  ;;  %v1856_v12 = vld [vmem:[#allocation2 + $0xd8] sm:$0xff] }
 0x24f   : > { %v1339_v58 = vpop.permute.xlu0 %1338  ;;  %v1840_v59 = vld [vmem:[#allocation2 + $0x58] sm:$0xff]  ;;  %1439 = vst.msk [vmem:[#allocation2 + $0xe0] sm:$0xff] %vm1410_vm7, %v1371_v37  ;;  %2761 = vmatmul.mubr.msk.f32.gmra.mxu1 %vm1866_vm10, %v1856_v12 }
 0x250   : > { %1423 = vst.msk [vmem:[#allocation2 + $0x60] sm:$0xff] %vm1410_vm7, %v1339_v58  ;;  %2737 = vmatmul.mubr.msk.f32.gmra.mxu0 %vm1866_vm10, %v1840_v59 }
 0x252   : > { %v1373_v49 = vpop.permute.xlu1 %1372 }
 0x253   : > { %v1341_v46 = vpop.permute.xlu0 %1340  ;;  %1440 = vst.msk [vmem:[#allocation2 + $0xe8] sm:$0xff] %vm1410_vm7, %v1373_v49  ;;  %v2723_v27 = vpop.f32.mrf.mxu0 }
 0x254   : > { %1424 = vst.msk [vmem:[#allocation2 + $0x68] sm:$0xff] %vm1410_vm7, %v1341_v46  ;;  %v2747_v48 = vpop.f32.mrf.mxu1  ;;  %v2200_v62 = vmul.f32 %v2723_v27, %v4014_v16 }
 0x255   : > { %v2216_v26 = vmul.f32 %v2747_v48, %v4014_v16  ;;  %v2033_v63 = vpop.f32.mrf.mxu0 }
 0x256   : > { %v2113_v17 = vpop.f32.mrf.mxu1  ;;  %v2239_v54 = vadd.f32 %v4021_v60, %v2200_v62  ;;  %v2199_v61 = vmul.f32 %v4014_v16, %v2033_v63  ;;  %v1564_v29 = vpop.permute.xlu1 %1563 }
 0x257   : > { %v2255_v30 = vadd.f32 %v4021_v60, %v2216_v26  ;;  %v2215_v15 = vmul.f32 %v4014_v16, %v2113_v17  ;;  %v1532_v23 = vpop.permute.xlu0 %1531  ;;  %1632 = vst.msk [vmem:[#allocation2 + $0xe0] sm:$0xff] %vm1603_vm8, %v1564_v29 }
 0x258   : > { %1616 = vst.msk [vmem:[#allocation2 + $0x60] sm:$0xff] %vm1603_vm8, %v1532_v23  ;;  %v2271_v41 = vmax.f32 %v2239_v54, 0.0  ;;  %v2238_v40 = vadd.f32 %v4021_v60, %v2199_v61 }
 0x259   : > { %v2287_v22 = vmax.f32 %v2255_v30, 0.0  ;;  %v2254_v7 = vadd.f32 %v4021_v60, %v2215_v15 }
 0x25a   : > { %2303 = vst [vmem:[%s4035_s24 + $0x8] sm:$0xff] %v2271_v41  ;;  %v2270_v55 = vmax.f32 %v2238_v40, 0.0  ;;  %v986_v6 = vpop.permute.xlu1 %985 }
 0x25b   : > { %2319 = vst [vmem:[%s4035_s24 + $0x88] sm:$0xff] %v2287_v22  ;;  %v2286_v50 = vmax.f32 %v2254_v7, 0.0  ;;  %v954_v51 = vpop.permute.xlu0 %953  ;;  %1052 = vst.msk [vmem:[#allocation2 + $0xf0] sm:$0xff] %vm1021_vm5, %v986_v6 }
 0x25c   : > { %1036 = vst.msk [vmem:[#allocation2 + $0x70] sm:$0xff] %vm1021_vm5, %v954_v51  ;;  %2302 = vst [vmem:[%s4035_s24] sm:$0xff] %v2270_v55 }
 0x25d   : > { %2318 = vst [vmem:[%s4035_s24 + $0x80] sm:$0xff] %v2286_v50 }
 0x25e   : > { %v1566_v18 = vpop.permute.xlu1 %1565 }
 0x25f   : > { %v1534_v56 = vpop.permute.xlu0 %1533  ;;  %1633 = vst.msk [vmem:[#allocation2 + $0xe8] sm:$0xff] %vm1603_vm8, %v1566_v18 }
 0x260   : > { %1617 = vst.msk [vmem:[#allocation2 + $0x68] sm:$0xff] %vm1603_vm8, %v1534_v56 }
 0x262   : > { %v1757_v57 = vpop.permute.xlu1 %1756 }
 0x263   : > { %v1725_v28 = vpop.permute.xlu0 %1724  ;;  %1825 = vst.msk [vmem:[#allocation2 + $0xe0] sm:$0xff] %vm1796_vm9, %v1757_v57 }
 0x264   : > { %1809 = vst.msk [vmem:[#allocation2 + $0x60] sm:$0xff] %vm1796_vm9, %v1725_v28 }
 0x266   : > { %v988_v31 = vpop.permute.xlu1 %987 }
 0x267   : > { %v956_v0 = vpop.permute.xlu0 %955  ;;  %1053 = vst.msk [vmem:[#allocation2 + $0xf8] sm:$0xff] %vm1021_vm5, %v988_v31 }
 0x268   : > { %1037 = vst.msk [vmem:[#allocation2 + $0x78] sm:$0xff] %vm1021_vm5, %v956_v0 }
 0x26a   : > { %v1179_v2 = vpop.permute.xlu1 %1178  ;;  %v1857_v33 = vld [vmem:[#allocation2 + $0xe0] sm:$0xff] }
 0x26b   : > { %v1147_v21 = vpop.permute.xlu0 %1146  ;;  %v1841_v32 = vld [vmem:[#allocation2 + $0x60] sm:$0xff]  ;;  %1245 = vst.msk [vmem:[#allocation2 + $0xf0] sm:$0xff] %vm1214_vm6, %v1179_v2  ;;  %2763 = vmatprep.mubr.msk.f32.mxu1 %vm1866_vm10, %v1857_v33 }
 0x26c   : > { %1229 = vst.msk [vmem:[#allocation2 + $0x70] sm:$0xff] %vm1214_vm6, %v1147_v21  ;;  %2739 = vmatprep.mubr.msk.f32.mxu0 %vm1866_vm10, %v1841_v32 }
 0x26e   : > { %v1759_v53 = vpop.permute.xlu1 %1758 }
 0x26f   : > { %v1727_v34 = vpop.permute.xlu0 %1726  ;;  %1826 = vst.msk [vmem:[#allocation2 + $0xe8] sm:$0xff] %vm1796_vm9, %v1759_v53 }
 0x270   : > { %1810 = vst.msk [vmem:[#allocation2 + $0x68] sm:$0xff] %vm1796_vm9, %v1727_v34 }
 0x272   : > { %v1181_v52 = vpop.permute.xlu1 %1180 }
 0x273   : > { %v1149_v35 = vpop.permute.xlu0 %1148  ;;  %1246 = vst.msk [vmem:[#allocation2 + $0xf8] sm:$0xff] %vm1214_vm6, %v1181_v52 }
 0x274   : > { %1230 = vst.msk [vmem:[#allocation2 + $0x78] sm:$0xff] %vm1214_vm6, %v1149_v35 }
 0x276   : > { %v1375_v8 = vpop.permute.xlu1 %1374  ;;  %v1858_v25 = vld [vmem:[#allocation2 + $0xe8] sm:$0xff] }
 0x277   : > { %v1343_v45 = vpop.permute.xlu0 %1342  ;;  %v1842_v9 = vld [vmem:[#allocation2 + $0x68] sm:$0xff]  ;;  %1441 = vst.msk [vmem:[#allocation2 + $0xf0] sm:$0xff] %vm1410_vm7, %v1375_v8  ;;  %v2726_v10 = vpop.f32.mrf.mxu0  ;;  %2764 = vmatmul.mubr.msk.f32.gmra.mxu1 %vm1866_vm10, %v1858_v25 }
 0x278   : > { %1425 = vst.msk [vmem:[#allocation2 + $0x70] sm:$0xff] %vm1410_vm7, %v1343_v45  ;;  %2740 = vmatmul.mubr.msk.f32.gmra.mxu0 %vm1866_vm10, %v1842_v9  ;;  %v2750_v44 = vpop.f32.mrf.mxu1  ;;  %v2202_v24 = vmul.f32 %v2726_v10, %v4014_v16 }
 0x279   : > { %v2218_v11 = vmul.f32 %v2750_v44, %v4014_v16  ;;  %v2043_v42 = vpop.f32.mrf.mxu0 }
 0x27a   : > { %v2123_v43 = vpop.f32.mrf.mxu1  ;;  %v2241_v14 = vadd.f32 %v4021_v60, %v2202_v24  ;;  %v2201_v13 = vmul.f32 %v4014_v16, %v2043_v42  ;;  %v1377_v20 = vpop.permute.xlu1 %1376 }
 0x27b   : > { %v2257_v3 = vadd.f32 %v4021_v60, %v2218_v11  ;;  %v2217_v1 = vmul.f32 %v4014_v16, %v2123_v43  ;;  %v1345_v39 = vpop.permute.xlu0 %1344  ;;  %1442 = vst.msk [vmem:[#allocation2 + $0xf8] sm:$0xff] %vm1410_vm7, %v1377_v20 }
 0x27c   : > { %1426 = vst.msk [vmem:[#allocation2 + $0x78] sm:$0xff] %vm1410_vm7, %v1345_v39  ;;  %v2273_v19 = vmax.f32 %v2241_v14, 0.0  ;;  %v2240_v38 = vadd.f32 %v4021_v60, %v2201_v13 }
 0x27d   : > { %v2289_v5 = vmax.f32 %v2257_v3, 0.0  ;;  %v2256_v36 = vadd.f32 %v4021_v60, %v2217_v1 }
 0x27e   : > { %2305 = vst [vmem:[%s4035_s24 + $0x18] sm:$0xff] %v2273_v19  ;;  %v2272_v4 = vmax.f32 %v2240_v38, 0.0  ;;  %v1568_v37 = vpop.permute.xlu1 %1567 }
 0x27f   : > { %2321 = vst [vmem:[%s4035_s24 + $0x98] sm:$0xff] %v2289_v5  ;;  %v2288_v47 = vmax.f32 %v2256_v36, 0.0  ;;  %v1536_v58 = vpop.permute.xlu0 %1535  ;;  %1634 = vst.msk [vmem:[#allocation2 + $0xf0] sm:$0xff] %vm1603_vm8, %v1568_v37 }
 0x280   : > { %1618 = vst.msk [vmem:[#allocation2 + $0x70] sm:$0xff] %vm1603_vm8, %v1536_v58  ;;  %2304 = vst [vmem:[%s4035_s24 + $0x10] sm:$0xff] %v2272_v4 }
 0x281   : > { %2320 = vst [vmem:[%s4035_s24 + $0x90] sm:$0xff] %v2288_v47 }
 0x282   : > { %v1570_v59 = vpop.permute.xlu1 %1569 }
 0x283   : > { %v1538_v12 = vpop.permute.xlu0 %1537  ;;  %1635 = vst.msk [vmem:[#allocation2 + $0xf8] sm:$0xff] %vm1603_vm8, %v1570_v59 }
 0x284   : > { %1619 = vst.msk [vmem:[#allocation2 + $0x78] sm:$0xff] %vm1603_vm8, %v1538_v12 }
 0x286   : > { %v1761_v49 = vpop.permute.xlu1 %1760 }
 0x287   : > { %v1729_v46 = vpop.permute.xlu0 %1728  ;;  %1827 = vst.msk [vmem:[#allocation2 + $0xf0] sm:$0xff] %vm1796_vm9, %v1761_v49 }
 0x288   : > { %1811 = vst.msk [vmem:[#allocation2 + $0x70] sm:$0xff] %vm1796_vm9, %v1729_v46 }
 0x28a   : > { %v1763_v27 = vpop.permute.xlu1 %1762 }
 0x28b   : > { %v1731_v48 = vpop.permute.xlu0 %1730  ;;  %1828 = vst.msk [vmem:[#allocation2 + $0xf8] sm:$0xff] %vm1796_vm9, %v1763_v27 }
 0x28c   : > { %1812 = vst.msk [vmem:[#allocation2 + $0x78] sm:$0xff] %vm1796_vm9, %v1731_v48 }
 0x28e   : > { %v1859_v26 = vld [vmem:[#allocation2 + $0xf0] sm:$0xff] }
 0x28f   : > { %v1843_v62 = vld [vmem:[#allocation2 + $0x70] sm:$0xff]  ;;  %2766 = vmatprep.mubr.msk.f32.mxu1 %vm1866_vm10, %v1859_v26 }
 0x290   : > { %2742 = vmatprep.mubr.msk.f32.mxu0 %vm1866_vm10, %v1843_v62 }
 0x292   : > { %v1860_v17 = vld [vmem:[#allocation2 + $0xf8] sm:$0xff] }
 0x293   : > { %v1844_v63 = vld [vmem:[#allocation2 + $0x78] sm:$0xff]  ;;  %2767 = vmatmul.mubr.msk.f32.gmra.mxu1 %vm1866_vm10, %v1860_v17 }
 0x294   : > { %2743 = vmatmul.mubr.msk.f32.gmra.mxu0 %vm1866_vm10, %v1844_v63 }
 0x29b   : > { %v2729_v54 = vpop.f32.mrf.mxu0 }
 0x29c   : > { %v2753_v30 = vpop.f32.mrf.mxu1  ;;  %v2204_v61 = vmul.f32 %v2729_v54, %v4014_v16 }
 0x29d   : > { %v2220_v15 = vmul.f32 %v2753_v30, %v4014_v16  ;;  %v2053_v29 = vpop.f32.mrf.mxu0 }
 0x29e   : > { %v2133_v23 = vpop.f32.mrf.mxu1  ;;  %v2243_v41 = vadd.f32 %v4021_v60, %v2204_v61  ;;  %v2203_v40 = vmul.f32 %v4014_v16, %v2053_v29 }
 0x29f   : > { %v2259_v22 = vadd.f32 %v4021_v60, %v2220_v15  ;;  %v2219_v7 = vmul.f32 %v4014_v16, %v2133_v23 }
 0x2a0   : > { %v2275_v55 = vmax.f32 %v2243_v41, 0.0  ;;  %v2242_v6 = vadd.f32 %v4021_v60, %v2203_v40 }
 0x2a1   : > { %v2291_v50 = vmax.f32 %v2259_v22, 0.0  ;;  %v2258_v51 = vadd.f32 %v4021_v60, %v2219_v7 }
 0x2a2   : > { %2307 = vst [vmem:[%s4035_s24 + $0x28] sm:$0xff] %v2275_v55  ;;  %v2274_v18 = vmax.f32 %v2242_v6, 0.0 }
 0x2a3   : > { %2323 = vst [vmem:[%s4035_s24 + $0xa8] sm:$0xff] %v2291_v50  ;;  %v2290_v56 = vmax.f32 %v2258_v51, 0.0 }
 0x2a4   : > { %2306 = vst [vmem:[%s4035_s24 + $0x20] sm:$0xff] %v2274_v18 }
 0x2a5   : > { %2322 = vst [vmem:[%s4035_s24 + $0xa0] sm:$0xff] %v2290_v56 }
 0x2bf   : > { %v2732_v57 = vpop.f32.mrf.mxu0 }
 0x2c0   : > { %v2756_v28 = vpop.f32.mrf.mxu1  ;;  %v2206_v31 = vmul.f32 %v2732_v57, %v4014_v16 }
 0x2c1   : > { %v2222_v0 = vmul.f32 %v2756_v28, %v4014_v16  ;;  %v2063_v2 = vpop.f32.mrf.mxu0 }
 0x2c2   : > { %v2143_v21 = vpop.f32.mrf.mxu1  ;;  %v2245_v32 = vadd.f32 %v4021_v60, %v2206_v31  ;;  %v2205_v53 = vmul.f32 %v4014_v16, %v2063_v2 }
 0x2c3   : > { %v2261_v33 = vadd.f32 %v4021_v60, %v2222_v0  ;;  %v2221_v34 = vmul.f32 %v4014_v16, %v2143_v21 }
 0x2c4   : > { %v2277_v52 = vmax.f32 %v2245_v32, 0.0  ;;  %v2244_v8 = vadd.f32 %v4021_v60, %v2205_v53 }
 0x2c5   : > { %v2293_v35 = vmax.f32 %v2261_v33, 0.0  ;;  %v2260_v45 = vadd.f32 %v4021_v60, %v2221_v34 }
 0x2c6   : > { %2309 = vst [vmem:[%s4035_s24 + $0x38] sm:$0xff] %v2277_v52  ;;  %v2276_v9 = vmax.f32 %v2244_v8, 0.0 }
 0x2c7   : > { %2325 = vst [vmem:[%s4035_s24 + $0xb8] sm:$0xff] %v2293_v35  ;;  %v2292_v25 = vmax.f32 %v2260_v45, 0.0 }
 0x2c8   : > { %2308 = vst [vmem:[%s4035_s24 + $0x30] sm:$0xff] %v2276_v9 }
 0x2c9   : > { %2324 = vst [vmem:[%s4035_s24 + $0xb0] sm:$0xff] %v2292_v25 }
 0x2e7   : > { %v2759_v44 = vpop.f32.mrf.mxu1 }
 0x2e8   : > { %v2735_v10 = vpop.f32.mrf.mxu0  ;;  %v2224_v11 = vmul.f32 %v2759_v44, %v4014_v16 }
 0x2e9   : > { %v2208_v24 = vmul.f32 %v2735_v10, %v4014_v16  ;;  %v2153_v43 = vpop.f32.mrf.mxu1 }
 0x2ea   : > { %v2073_v42 = vpop.f32.mrf.mxu0  ;;  %v2263_v3 = vadd.f32 %v4021_v60, %v2224_v11  ;;  %v2223_v1 = vmul.f32 %v4014_v16, %v2153_v43 }
 0x2eb   : > { %v2247_v14 = vadd.f32 %v4021_v60, %v2208_v24  ;;  %v2207_v13 = vmul.f32 %v4014_v16, %v2073_v42 }
 0x2ec   : > { %v2295_v39 = vmax.f32 %v2263_v3, 0.0  ;;  %v2262_v5 = vadd.f32 %v4021_v60, %v2223_v1 }
 0x2ed   : > { %v2279_v20 = vmax.f32 %v2247_v14, 0.0  ;;  %v2246_v19 = vadd.f32 %v4021_v60, %v2207_v13 }
 0x2ee   : > { %2327 = vst [vmem:[%s4035_s24 + $0xc8] sm:$0xff] %v2295_v39  ;;  %v2294_v36 = vmax.f32 %v2262_v5, 0.0 }
 0x2ef   : > { %2311 = vst [vmem:[%s4035_s24 + $0x48] sm:$0xff] %v2279_v20  ;;  %v2278_v38 = vmax.f32 %v2246_v19, 0.0 }
 0x2f0   : > { %2326 = vst [vmem:[%s4035_s24 + $0xc0] sm:$0xff] %v2294_v36 }
 0x2f1   : > { %2310 = vst [vmem:[%s4035_s24 + $0x40] sm:$0xff] %v2278_v38 }
 0x30f   : > { %v2762_v47 = vpop.f32.mrf.mxu1 }
 0x310   : > { %v2738_v4 = vpop.f32.mrf.mxu0  ;;  %v2226_v58 = vmul.f32 %v2762_v47, %v4014_v16 }
 0x311   : > { %v2210_v37 = vmul.f32 %v2738_v4, %v4014_v16  ;;  %v2163_v12 = vpop.f32.mrf.mxu1 }
 0x312   : > { %v2083_v59 = vpop.f32.mrf.mxu0  ;;  %v2265_v46 = vadd.f32 %v4021_v60, %v2226_v58  ;;  %v2225_v48 = vmul.f32 %v4014_v16, %v2163_v12 }
 0x313   : > { %v2249_v49 = vadd.f32 %v4021_v60, %v2210_v37  ;;  %v2209_v27 = vmul.f32 %v4014_v16, %v2083_v59 }
 0x314   : > { %v2297_v26 = vmax.f32 %v2265_v46, 0.0  ;;  %v2264_v17 = vadd.f32 %v4021_v60, %v2225_v48 }
 0x315   : > { %v2281_v62 = vmax.f32 %v2249_v49, 0.0  ;;  %v2248_v63 = vadd.f32 %v4021_v60, %v2209_v27 }
 0x316   : > { %2329 = vst [vmem:[%s4035_s24 + $0xd8] sm:$0xff] %v2297_v26  ;;  %v2296_v30 = vmax.f32 %v2264_v17, 0.0 }
 0x317   : > { %2313 = vst [vmem:[%s4035_s24 + $0x58] sm:$0xff] %v2281_v62  ;;  %v2280_v54 = vmax.f32 %v2248_v63, 0.0 }
 0x318   : > { %2328 = vst [vmem:[%s4035_s24 + $0xd0] sm:$0xff] %v2296_v30 }
 0x319   : > { %2312 = vst [vmem:[%s4035_s24 + $0x50] sm:$0xff] %v2280_v54 }
 0x337   : > { %v2765_v15 = vpop.f32.mrf.mxu1 }
 0x338   : > { %v2741_v61 = vpop.f32.mrf.mxu0  ;;  %v2228_v23 = vmul.f32 %v2765_v15, %v4014_v16 }
 0x339   : > { %v2212_v29 = vmul.f32 %v2741_v61, %v4014_v16  ;;  %v2173_v22 = vpop.f32.mrf.mxu1 }
 0x33a   : > { %v2093_v41 = vpop.f32.mrf.mxu0  ;;  %v2267_v7 = vadd.f32 %v4021_v60, %v2228_v23  ;;  %v2227_v50 = vmul.f32 %v4014_v16, %v2173_v22 }
 0x33b   : > { %v2251_v40 = vadd.f32 %v4021_v60, %v2212_v29  ;;  %v2211_v55 = vmul.f32 %v4014_v16, %v2093_v41 }
 0x33c   : > { %v2299_v51 = vmax.f32 %v2267_v7, 0.0  ;;  %v2266_v56 = vadd.f32 %v4021_v60, %v2227_v50 }
 0x33d   : > { %v2283_v6 = vmax.f32 %v2251_v40, 0.0  ;;  %v2250_v18 = vadd.f32 %v4021_v60, %v2211_v55 }
 0x33e   : > { %2331 = vst [vmem:[%s4035_s24 + $0xe8] sm:$0xff] %v2299_v51  ;;  %v2298_v28 = vmax.f32 %v2266_v56, 0.0 }
 0x33f   : > { %2315 = vst [vmem:[%s4035_s24 + $0x68] sm:$0xff] %v2283_v6  ;;  %v2282_v57 = vmax.f32 %v2250_v18, 0.0 }
 0x340   : > { %2330 = vst [vmem:[%s4035_s24 + $0xe0] sm:$0xff] %v2298_v28 }
 0x341   : > { %2314 = vst [vmem:[%s4035_s24 + $0x60] sm:$0xff] %v2282_v57 }
 0x353   : > { %v2768_v0 = vpop.f32.mrf.mxu1 }
 0x354   : > { %v2744_v31 = vpop.f32.mrf.mxu0  ;;  %v2230_v21 = vmul.f32 %v2768_v0, %v4014_v16 }
 0x355   : > { %v2214_v2 = vmul.f32 %v2744_v31, %v4014_v16  ;;  %v2183_v33 = vpop.f32.mrf.mxu1 }
 0x356   : > { %v2103_v32 = vpop.f32.mrf.mxu0  ;;  %v2269_v34 = vadd.f32 %v4021_v60, %v2230_v21  ;;  %v2229_v35 = vmul.f32 %v4014_v16, %v2183_v33 }
 0x357   : > { %v2253_v53 = vadd.f32 %v4021_v60, %v2214_v2  ;;  %v2213_v52 = vmul.f32 %v4014_v16, %v2103_v32 }
 0x358   : > { %v2301_v45 = vmax.f32 %v2269_v34, 0.0  ;;  %v2268_v25 = vadd.f32 %v4021_v60, %v2229_v35 }
 0x359   : > { %v2285_v8 = vmax.f32 %v2253_v53, 0.0  ;;  %v2252_v9 = vadd.f32 %v4021_v60, %v2213_v52 }
 0x35a   : > { %2333 = vst [vmem:[%s4035_s24 + $0xf8] sm:$0xff] %v2301_v45  ;;  %v2300_v44 = vmax.f32 %v2268_v25, 0.0 }
 0x35b   : > { %2317 = vst [vmem:[%s4035_s24 + $0x78] sm:$0xff] %v2285_v8  ;;  %v2284_v10 = vmax.f32 %v2252_v9, 0.0 }
 0x35c   : > { %2332 = vst [vmem:[%s4035_s24 + $0xf0] sm:$0xff] %v2300_v44 }
 0x35d   : > { %2316 = vst [vmem:[%s4035_s24 + $0x70] sm:$0xff] %v2284_v10 }
 0x35e   : > { %2857 = shalt.err (!%p2854_p5)
}
 0x35f   : > { %s2858_s7 = scalar_lea.hbm %s4160_s6, 4096  ;;  %s2862_s14 = scalar_lea.hbm %s4220_s4, 8192 }
 0x360   : > { %p2859_p6 = scmp.ne.s32.totalorder %s4160_s6, %s2858_s7  ;;  %p2863_p10 = scmp.lt.s32.totalorder %s4160_s6, %s4220_s4 }
 0x361   : > { %p2864_p11 = scmp.lt.s32.totalorder %s2862_s14, %s2858_s7 }
 0x362   : > { %p2860_p7 = pnand %p2859_p6, %p2997_p4 }
 0x363   : > { %p2865_p12 = por %p2864_p11, %p2863_p10 }
 0x364   : > { %p2861_p9 = pneg %p2860_p7 }
 0x366   : > { %p2866_p13 = pnand %p2865_p12, %p2861_p9 }
 0x368   : > { %2869 = shalt.err (!%p2866_p13)
}
 0x369   : > { %s2931_s26 = smov 128  }
 0x36a   : > { %2780 = dma.vmem_to_hbm [thread:$0]  (%p2997_p4), %s4164_s29, 4096, %s4160_s6, %s4170_s18, %s2931_s26, %s2931_s26, %s2923_s9  }
 0x36b PF: > { %p2786_p0 = scmp.ge.s32.totalorder %s2920_s20, 2  ;;  %s2366_s30 = sand.u32 1, %s2900_s15  }
 0x36c   : > { %s2367_s5 = scalar_lea.sflag [#allocation4], %s2366_s30 }
 0x36d   : > { %p2783_p1 = pnand %p2786_p0, %p3004_p8 }
 0x36f   : > { %p2784_p2 = pneg %p2783_p1 }
 0x371   : > { %2895 = dma.done.wait (%p2784_p2), %s2367_s5, 4096  }
 0x372   : > { %2897 = vsyncadd (%p2784_p2), %s2367_s5, 4294963200  ;;  %s17_s20 = sadd.s32 1, %s2920_s20   ;;  %s4250_s15 = smov %s2904_s16 }
 0x373   : > { %p14_p3 = scmp.ge.s32.totalorder %s17_s20, 4   ;;  %s4251_s16 = smov %s2908_s17 }
 0x374   : > { %s4252_s17 = smov %s3010_s28  ;;  %s4253_s18 = smov %s2916_s19 }
 0x375   : > { %s4254_s19 = smov %s4256_s23  ;;  %16 = sbr.rel (!%p14_p3) target bundleno = 4 (0x4), region = 74 }
 0x37a   :  { %2372 = vsyncpa [#allocation4], 1 }
 0x37b   :  { %2374 = vsyncpa [#allocation4 + $0x1], 1 }

</bundles_post_ra>
